<compile_context>
chip_gen: v7x
topology: tpu7x:2x2x1
jax: 0.10.0
libtpu: 0.0.40
codegen_flags: <defaults>
</compile_context>

<pallas_src>
import functools
import math

import jax
import jax.numpy as jnp
from jax import lax
from jax.experimental import pallas as pl
from jax.experimental.pallas import tpu as pltpu

EPS = 1e-5  # BatchNorm2d default eps


def _round_up(x, m):
    return (x + m - 1) // m * m


# ----------------------------------------------------------------------------
# Kernel 1: tiled matmul + bias + partial BN stats (1x1 convs and stride-2 im2col convs)
# ----------------------------------------------------------------------------
def _mm_stats_kernel(m_real, tm, a_ref, w_ref, b_ref, y_ref, s_ref, ss_ref):
    y = jnp.dot(a_ref[...], w_ref[...], preferred_element_type=jnp.float32) + b_ref[...]
    y_ref[...] = y
    # mask padded rows out of the BN statistics
    row = pl.program_id(0) * tm + lax.broadcasted_iota(jnp.int32, (tm, 1), 0)
    ym = jnp.where(row < m_real, y, 0.0)
    s_ref[...] = jnp.sum(ym, axis=0).reshape(1, 1, -1)
    ss_ref[...] = jnp.sum(ym * ym, axis=0).reshape(1, 1, -1)


@functools.lru_cache(maxsize=None)
def _mm_stats_call(m_real, mp, k, n, tm):
    grid_m = mp // tm
    kernel = functools.partial(_mm_stats_kernel, m_real, tm)
    return pl.pallas_call(
        kernel,
        out_shape=(
            jax.ShapeDtypeStruct((mp, n), jnp.float32),
            jax.ShapeDtypeStruct((grid_m, 1, n), jnp.float32),
            jax.ShapeDtypeStruct((grid_m, 1, n), jnp.float32),
        ),
        grid=(grid_m,),
        in_specs=[
            pl.BlockSpec((tm, k), lambda i: (i, 0)),
            pl.BlockSpec((k, n), lambda i: (0, 0)),
            pl.BlockSpec((1, n), lambda i: (0, 0)),
        ],
        out_specs=(
            pl.BlockSpec((tm, n), lambda i: (i, 0)),
            pl.BlockSpec((1, 1, n), lambda i: (i, 0, 0)),
            pl.BlockSpec((1, 1, n), lambda i: (i, 0, 0)),
        ),
        compiler_params=pltpu.CompilerParams(dimension_semantics=("parallel",)),
    )


def matmul_bias_stats(a, w, b):
    """(M,K)bf16 @ (K,N)bf16 + b -> (Mp,N)f32, plus per-channel sum / sum-of-squares."""
    m, k = a.shape
    n = w.shape[-1]
    if m >= 512:
        tm = 512
        mp = _round_up(m, tm)
    else:
        mp = _round_up(m, 8)
        tm = mp
    a_p = a if mp == m else jnp.pad(a, ((0, mp - m), (0, 0)))
    y, s, ss = _mm_stats_call(m, mp, k, n, tm)(a_p, w, b.reshape(1, n))
    return y, jnp.sum(s, axis=(0, 1)), jnp.sum(ss, axis=(0, 1)), tm


# ----------------------------------------------------------------------------
# Kernel 2: fused stride-1 conv (kh*kw > 1): shifted row-slices of the flattened padded image
# ----------------------------------------------------------------------------
def _fused_conv_kernel(kh, kw, wp, oh, ow, x_ref, w_ref, b_ref, y_ref, s_ref, ss_ref):
    m2 = oh * wp
    acc = None
    for i in range(kh):
        for j in range(kw):
            a = x_ref[0, pl.ds(i * wp + j, m2), :]  # (m2, Cin) bf16, contiguous shifted rows
            d = jnp.dot(a, w_ref[i * kw + j], preferred_element_type=jnp.float32)
            acc = d if acc is None else acc + d
    y = acc + b_ref[...]
    y_ref[0] = y
    if ow == wp:
        ym = y
    else:
        # columns ow..wp-1 are wrap-around garbage: exclude from BN statistics
        col = lax.broadcasted_iota(jnp.int32, (m2, 1), 0) % wp
        ym = jnp.where(col < ow, y, 0.0)
    s_ref[...] = jnp.sum(ym, axis=0).reshape(1, 1, -1)
    ss_ref[...] = jnp.sum(ym * ym, axis=0).reshape(1, 1, -1)


@functools.lru_cache(maxsize=None)
def _fused_conv_call(n, l2, cin, cout, kh, kw, wp, oh, ow):
    taps = kh * kw
    m2 = oh * wp
    kernel = functools.partial(_fused_conv_kernel, kh, kw, wp, oh, ow)
    return pl.pallas_call(
        kernel,
        out_shape=(
            jax.ShapeDtypeStruct((n, m2, cout), jnp.float32),
            jax.ShapeDtypeStruct((n, 1, cout), jnp.float32),
            jax.ShapeDtypeStruct((n, 1, cout), jnp.float32),
        ),
        grid=(n,),
        in_specs=[
            pl.BlockSpec((1, l2, cin), lambda b: (b, 0, 0)),
            pl.BlockSpec((taps, cin, cout), lambda b: (0, 0, 0)),
            pl.BlockSpec((1, cout), lambda b: (0, 0)),
        ],
        out_specs=(
            pl.BlockSpec((1, m2, cout), lambda b: (b, 0, 0)),
            pl.BlockSpec((1, 1, cout), lambda b: (b, 0, 0)),
            pl.BlockSpec((1, 1, cout), lambda b: (b, 0, 0)),
        ),
        compiler_params=pltpu.CompilerParams(dimension_semantics=("parallel",)),
    )


# ----------------------------------------------------------------------------
# Kernel 3: BN(scale,shift) + ReLU, bf16 output
# ----------------------------------------------------------------------------
def _bn_relu2d_kernel(y_ref, s_ref, t_ref, o_ref):
    o_ref[...] = jnp.maximum(y_ref[...] * s_ref[...] + t_ref[...], 0.0).astype(jnp.bfloat16)


@functools.lru_cache(maxsize=None)
def _bn_relu2d_call(mp, n, tm):
    return pl.pallas_call(
        _bn_relu2d_kernel,
        out_shape=jax.ShapeDtypeStruct((mp, n), jnp.bfloat16),
        grid=(mp // tm,),
        in_specs=[
            pl.BlockSpec((tm, n), lambda i: (i, 0)),
            pl.BlockSpec((1, n), lambda i: (0, 0)),
            pl.BlockSpec((1, n), lambda i: (0, 0)),
        ],
        out_specs=pl.BlockSpec((tm, n), lambda i: (i, 0)),
        compiler_params=pltpu.CompilerParams(dimension_semantics=("parallel",)),
    )


def _bn_relu_crop_kernel(ow, x_ref, s_ref, t_ref, o_ref):
    v = x_ref[0, :, pl.ds(0, ow), :]  # crop the wrap-around columns of the fused-conv output
    o_ref[0] = jnp.maximum(v * s_ref[...] + t_ref[...], 0.0).astype(jnp.bfloat16)


@functools.lru_cache(maxsize=None)
def _bn_relu_crop_call(n, oh, wp, ow, c):
    kernel = functools.partial(_bn_relu_crop_kernel, ow)
    return pl.pallas_call(
        kernel,
        out_shape=jax.ShapeDtypeStruct((n, oh, ow, c), jnp.bfloat16),
        grid=(n,),
        in_specs=[
            pl.BlockSpec((1, oh, wp, c), lambda b: (b, 0, 0, 0)),
            pl.BlockSpec((1, c), lambda b: (0, 0)),
            pl.BlockSpec((1, c), lambda b: (0, 0)),
        ],
        out_specs=pl.BlockSpec((1, oh, ow, c), lambda b: (b, 0, 0, 0)),
        compiler_params=pltpu.CompilerParams(dimension_semantics=("parallel",)),
    )


# ----------------------------------------------------------------------------
# Kernel 4: pooling (3x3) -- input read once per image, no stacked-slice materialization
# ----------------------------------------------------------------------------
def _avgpool_kernel(h, w, c, x_ref, o_ref):
    acc = jnp.zeros((h, w, c), jnp.float32)
    for i in range(3):
        for j in range(3):
            acc = acc + x_ref[0, pl.ds(i, h), pl.ds(j, w), :].astype(jnp.float32)
    o_ref[0] = (acc * (1.0 / 9.0)).astype(jnp.bfloat16)


@functools.lru_cache(maxsize=None)
def _avgpool_call(n, h, w, c):
    kernel = functools.partial(_avgpool_kernel, h, w, c)
    return pl.pallas_call(
        kernel,
        out_shape=jax.ShapeDtypeStruct((n, h, w, c), jnp.bfloat16),
        grid=(n,),
        in_specs=[pl.BlockSpec((1, h + 2, w + 2, c), lambda b: (b, 0, 0, 0))],
        out_specs=pl.BlockSpec((1, h, w, c), lambda b: (b, 0, 0, 0)),
        compiler_params=pltpu.CompilerParams(dimension_semantics=("parallel",)),
    )


def _maxpool_s1_kernel(oh, ow, x_ref, o_ref):
    m = None
    for i in range(3):
        for j in range(3):
            v = x_ref[0, pl.ds(i, oh), pl.ds(j, ow), :]
            m = v if m is None else jnp.maximum(m, v)
    o_ref[0] = m


@functools.lru_cache(maxsize=None)
def _maxpool_call(n, h, w, c):
    oh, ow = h - 2, w - 2
    kernel = functools.partial(_maxpool_s1_kernel, oh, ow)
    return pl.pallas_call(
        kernel,
        out_shape=jax.ShapeDtypeStruct((n, oh, ow, c), jnp.bfloat16),
        grid=(n,),
        in_specs=[pl.BlockSpec((1, h, w, c), lambda b: (b, 0, 0, 0))],
        out_specs=pl.BlockSpec((1, oh, ow, c), lambda b: (b, 0, 0, 0)),
        compiler_params=pltpu.CompilerParams(dimension_semantics=("parallel",)),
    )


def avgpool3x3_s1_p1(x):
    n, h, w, c = x.shape
    xp = jnp.pad(x, ((0, 0), (1, 1), (1, 1), (0, 0)))
    return _avgpool_call(n, h, w, c)(xp)


def maxpool3x3_s2(x):
    n, h, w, c = x.shape
    y = _maxpool_call(n, h, w, c)(x)  # stride-1 3x3 max in the kernel
    # TODO(synk): stride-2 subsample done in XLA glue to avoid in-kernel strided sublane loads.
    return y[:, ::2, ::2, :]


# ----------------------------------------------------------------------------
# Kernel 5: fused Linear + softmax head
# ----------------------------------------------------------------------------
def _fc_softmax_kernel(x_ref, w_ref, b_ref, o_ref):
    y = jnp.dot(x_ref[...], w_ref[...], preferred_element_type=jnp.float32) + b_ref[...]
    m = jnp.max(y, axis=-1, keepdims=True)
    e = jnp.exp(y - m)
    o_ref[...] = e / jnp.sum(e, axis=-1, keepdims=True)


@functools.lru_cache(maxsize=None)
def _fc_softmax_call(n, k, c):
    return pl.pallas_call(
        _fc_softmax_kernel,
        out_shape=jax.ShapeDtypeStruct((n, c), jnp.float32),
        grid=(1,),
        in_specs=[
            pl.BlockSpec((n, k), lambda i: (0, 0)),
            pl.BlockSpec((k, c), lambda i: (0, 0)),
            pl.BlockSpec((1, c), lambda i: (0, 0)),
        ],
        out_specs=pl.BlockSpec((n, c), lambda i: (0, 0)),
    )


def fc_softmax(x, w, b):
    n, k = x.shape
    c = w.shape[1]
    return _fc_softmax_call(n, k, c)(x, w, b.reshape(1, c))


# ----------------------------------------------------------------------------
# Glue: im2col (stride != 1 convs only), conv_block dispatch, BN stat finalization
# ----------------------------------------------------------------------------
def _im2col(x, kh, kw, sh, sw, ph, pw):
    n, h, w, c = x.shape
    xp = jnp.pad(x, ((0, 0), (ph, ph), (pw, pw), (0, 0)))
    hp, wp = h + 2 * ph, w + 2 * pw
    oh = (hp - kh) // sh + 1
    ow = (wp - kw) // sw + 1
    cols = []
    for i in range(kh):
        for j in range(kw):
            cols.append(xp[:, i : i + sh * (oh - 1) + 1 : sh,
                           j : j + sw * (ow - 1) + 1 : sw, :])
    patches = jnp.stack(cols, axis=-1)  # (N, OH, OW, C, taps) -> feature index = c*taps + t
    return patches.reshape(n * oh * ow, c * kh * kw), (oh, ow)


def _bn_scale_shift(p, s_tot, ss_tot, count):
    mean = s_tot / count
    var = jnp.maximum(ss_tot / count - mean * mean, 0.0)  # biased variance (BN train mode)
    scale = p["gamma"] * lax.rsqrt(var + EPS)
    shift = p["beta"] - mean * scale
    return scale.reshape(1, -1), shift.reshape(1, -1)


def conv_block_apply(p, x):
    """Conv2d(+bias) -> BatchNorm2d (training-mode batch stats) -> ReLU, bf16 output."""
    kh, kw = p["ksize"]
    sh, sw = p["stride"]
    ph, pw = p["pad"]
    n, h, w, cin = x.shape
    cout = p["b"].shape[0]

    if (kh, kw) == (1, 1) or (sh, sw) != (1, 1):
        # matmul path: 1x1 conv = plain reshape; stride-2 conv = im2col in JAX glue.
        if (kh, kw) == (1, 1):
            oh, ow = h, w
            patches = x.reshape(n * h * w, cin)
        else:
            patches, (oh, ow) = _im2col(x, kh, kw, sh, sw, ph, pw)
        w2 = jnp.transpose(p["w"], (1, 0, 2)).reshape(cin * kh * kw, cout)
        m = n * oh * ow
        y, s_tot, ss_tot, tm = matmul_bias_stats(patches, w2, p["b"])
        scale, shift = _bn_scale_shift(p, s_tot, ss_tot, float(m))
        out = _bn_relu2d_call(y.shape[0], cout, tm)(y, scale, shift)
        return out[:m].reshape(n, oh, ow, cout)

    # fused stride-1 path: shifted row-slices of the flattened padded image, no im2col tensor.
    hp, wp = h + 2 * ph, w + 2 * pw
    oh, ow = hp - kh + 1, wp - kw + 1
    extra = 1 if kw > 1 else 0  # one extra zero row so the last taps' slices stay in bounds
    xp = jnp.pad(x, ((0, 0), (ph, ph + extra), (pw, pw), (0, 0)))
    l2 = (hp + extra) * wp
    x2 = xp.reshape(n, l2, cin)
    y, s, ss = _fused_conv_call(n, l2, cin, cout, kh, kw, wp, oh, ow)(
        x2, p["w"], p["b"].reshape(1, cout))
    m = n * oh * ow
    scale, shift = _bn_scale_shift(p, jnp.sum(s, axis=(0, 1)), jnp.sum(ss, axis=(0, 1)), float(m))
    y4 = y.reshape(n, oh, wp, cout)
    return _bn_relu_crop_call(n, oh, wp, ow, cout)(y4, scale, shift)


def seq_apply(blocks, x):
    for p in blocks:
        x = conv_block_apply(p, x)
    return x


# ----------------------------------------------------------------------------
# Parameter construction (deterministic, synthetic)
# ----------------------------------------------------------------------------
class ParamGen:
    def __init__(self, seed=0):
        self._key = jax.random.PRNGKey(seed)
        self._n = 0

    def normal(self, shape, scale=1.0):
        self._n += 1
        k = jax.random.fold_in(self._key, self._n)
        return scale * jax.random.normal(k, shape, dtype=jnp.float32)


def _pair(v):
    return (v, v) if isinstance(v, int) else tuple(v)


def make_conv_block(pg, cin, cout, kernel_size, stride=1, padding=0):
    kh, kw = _pair(kernel_size)
    sh, sw = _pair(stride)
    ph, pw = _pair(padding)
    k = cin * kh * kw
    return {
        # weights stored tap-major: (KH*KW, Cin, Cout), bf16 for the MXU
        "w": pg.normal((kh * kw, cin, cout), scale=1.0 / math.sqrt(k)).astype(jnp.bfloat16),
        "b": pg.normal((cout,), scale=0.01),
        "gamma": 1.0 + pg.normal((cout,), scale=0.05),
        "beta": pg.normal((cout,), scale=0.05),
        "ksize": (kh, kw),
        "stride": (sh, sw),
        "pad": (ph, pw),
    }
    # TODO(synk): non-multiple-of-128 Cout (96/224/320/448) still uses masked lane stores;
    # full channel padding through concat was skipped to keep the bookkeeping simple.


def make_stem(pg, in_features):
    return {
        "start": [
            make_conv_block(pg, in_features, 32, 3, 2, 0),
            make_conv_block(pg, 32, 32, 3, 1, 0),
            make_conv_block(pg, 32, 64, 3, 1, 1),
        ],
        "conv1": make_conv_block(pg, 64, 96, 3, 2, 0),
        "branch1": [
            make_conv_block(pg, 160, 64, 1, 1, 0),
            make_conv_block(pg, 64, 96, 3, 1, 0),
        ],
        "branch2": [
            make_conv_block(pg, 160, 64, 1, 1, 0),
            make_conv_block(pg, 64, 64, (7, 1), 1, (3, 0)),
            make_conv_block(pg, 64, 64, (1, 7), 1, (0, 3)),
            make_conv_block(pg, 64, 96, 3, 1, 0),
        ],
        "conv2": make_conv_block(pg, 192, 192, 3, 2, 0),
    }


def stem_apply(p, x):
    x = seq_apply(p["start"], x)
    x = jnp.concatenate([maxpool3x3_s2(x), conv_block_apply(p["conv1"], x)], axis=-1)
    x = jnp.concatenate([seq_apply(p["branch1"], x), seq_apply(p["branch2"], x)], axis=-1)
    x = jnp.concatenate([maxpool3x3_s2(x), conv_block_apply(p["conv2"], x)], axis=-1)
    return x


def make_inception_a(pg):
    return {
        "b1": make_conv_block(pg, 384, 96, 1, 1, 0),
        "b2": make_conv_block(pg, 384, 96, 1, 1, 0),
        "b3": [make_conv_block(pg, 384, 64, 1, 1, 0),
               make_conv_block(pg, 64, 96, 3, 1, 1)],
        "b4": [make_conv_block(pg, 384, 64, 1, 1, 0),
               make_conv_block(pg, 64, 96, 3, 1, 1),
               make_conv_block(pg, 96, 96, 3, 1, 1)],
    }


def inception_a_apply(p, x):
    b1 = conv_block_apply(p["b1"], avgpool3x3_s1_p1(x))
    b2 = conv_block_apply(p["b2"], x)
    b3 = seq_apply(p["b3"], x)
    b4 = seq_apply(p["b4"], x)
    return jnp.concatenate([b1, b2, b3, b4], axis=-1)


def make_reduction_a(pg):
    return {
        "b2": make_conv_block(pg, 384, 384, 3, 2, 0),
        "b3": [make_conv_block(pg, 384, 192, 1, 1, 0),
               make_conv_block(pg, 192, 224, 3, 1, 1),
               make_conv_block(pg, 224, 256, 3, 2, 0)],
    }


def reduction_a_apply(p, x):
    return jnp.concatenate(
        [maxpool3x3_s2(x), conv_block_apply(p["b2"], x), seq_apply(p["b3"], x)], axis=-1
    )


def make_inception_b(pg):
    return {
        "b1": make_conv_block(pg, 1024, 128, 1, 1, 0),
        "b2": make_conv_block(pg, 1024, 384, 1, 1, 0),
        "b3": [make_conv_block(pg, 1024, 192, 1, 1, 0),
               make_conv_block(pg, 192, 224, (1, 7), 1, (0, 3)),
               make_conv_block(pg, 224, 256, (1, 7), 1, (0, 3))],
        "b4": [make_conv_block(pg, 1024, 192, 1, 1, 0),
               make_conv_block(pg, 192, 192, (1, 7), 1, (0, 3)),
               make_conv_block(pg, 192, 224, (7, 1), 1, (3, 0)),
               make_conv_block(pg, 224, 224, (1, 7), 1, (0, 3)),
               make_conv_block(pg, 224, 256, (7, 1), 1, (3, 0))],
    }


def inception_b_apply(p, x):
    b1 = conv_block_apply(p["b1"], avgpool3x3_s1_p1(x))
    b2 = conv_block_apply(p["b2"], x)
    b3 = seq_apply(p["b3"], x)
    b4 = seq_apply(p["b4"], x)
    return jnp.concatenate([b1, b2, b3, b4], axis=-1)


def make_reduction_b(pg):
    return {
        "b2": [make_conv_block(pg, 1024, 192, 1, 1, 0),
               make_conv_block(pg, 192, 192, 3, 2, 0)],
        "b3": [make_conv_block(pg, 1024, 256, 1, 1, 0),
               make_conv_block(pg, 256, 256, (1, 7), 1, (0, 3)),
               make_conv_block(pg, 256, 320, (7, 1), 1, (3, 0)),
               make_conv_block(pg, 320, 320, 3, 2, 0)],
    }


def reduction_b_apply(p, x):
    return jnp.concatenate(
        [maxpool3x3_s2(x), seq_apply(p["b2"], x), seq_apply(p["b3"], x)], axis=-1
    )


def make_inception_c(pg):
    return {
        "b1": make_conv_block(pg, 1536, 256, 1, 1, 0),
        "b2": make_conv_block(pg, 1536, 256, 1, 1, 0),
        "b3_1": make_conv_block(pg, 1536, 384, 1, 1, 0),
        "b3_2a": make_conv_block(pg, 384, 256, (1, 3), 1, (0, 1)),
        "b3_2b": make_conv_block(pg, 384, 256, (3, 1), 1, (1, 0)),
        "b4_1": [make_conv_block(pg, 1536, 384, 1, 1, 0),
                 make_conv_block(pg, 384, 448, (1, 3), 1, (0, 1)),
                 make_conv_block(pg, 448, 512, (3, 1), 1, (1, 0))],
        "b4_2a": make_conv_block(pg, 512, 256, (3, 1), 1, (1, 0)),
        "b4_2b": make_conv_block(pg, 512, 256, (1, 3), 1, (0, 1)),
    }


def inception_c_apply(p, x):
    b1 = conv_block_apply(p["b1"], avgpool3x3_s1_p1(x))
    b2 = conv_block_apply(p["b2"], x)
    out = conv_block_apply(p["b3_1"], x)
    b3 = jnp.concatenate(
        [conv_block_apply(p["b3_2a"], out), conv_block_apply(p["b3_2b"], out)], axis=-1
    )
    out = seq_apply(p["b4_1"], x)
    b4 = jnp.concatenate(
        [conv_block_apply(p["b4_2a"], out), conv_block_apply(p["b4_2b"], out)], axis=-1
    )
    return jnp.concatenate([b1, b2, b3, b4], axis=-1)


def make_googlenet(pg, in_channels=3, num_classes=16):
    return {
        "stem": make_stem(pg, in_channels),
        "A": [make_inception_a(pg) for _ in range(4)],
        "redA": make_reduction_a(pg),
        "B": [make_inception_b(pg) for _ in range(7)],
        "redB": make_reduction_b(pg),
        "C": [make_inception_c(pg) for _ in range(3)],
        "fc_w": pg.normal((1536, num_classes), scale=1.0 / math.sqrt(1536)),
        "fc_b": pg.normal((num_classes,), scale=0.01),
    }


def googlenet_apply(params, x_nchw):
    # NCHW f32 -> NHWC bf16 (channels on the lane dimension, bf16 feeds the MXU)
    x = jnp.transpose(x_nchw, (0, 2, 3, 1)).astype(jnp.bfloat16)
    x = stem_apply(params["stem"], x)
    for bp in params["A"]:
        x = inception_a_apply(bp, x)
    x = reduction_a_apply(params["redA"], x)
    for bp in params["B"]:
        x = inception_b_apply(bp, x)
    x = reduction_b_apply(params["redB"], x)
    for bp in params["C"]:
        x = inception_c_apply(bp, x)
    x = jnp.mean(x.astype(jnp.float32), axis=(1, 2))  # AdaptiveAvgPool2d(1) + flatten
    # TODO(synk): nn.Dropout(p=0.2) is applied as identity (eval semantics); PyTorch
    # train-mode dropout randomness cannot be reproduced with a different RNG.
    return fc_softmax(x, params["fc_w"], params["fc_b"])  # fused Linear + softmax


if __name__ == "__main__":
    pg = ParamGen(seed=0)
    params = make_googlenet(pg, in_channels=3, num_classes=16)
    # 75x75 is the minimal spatial size that survives all stride-2 stages.
    x = jax.random.normal(jax.random.PRNGKey(0), (2, 3, 75, 75), dtype=jnp.float32)
    out = jax.block_until_ready(googlenet_apply(params, x))
    assert out.shape == (2, 16), out.shape
    assert bool(jnp.all(jnp.isfinite(out)))
    print("KERNEL_OK")
</pallas_src>

<mosaic_0001>
module attributes {stable_mosaic.version = 11 : i64} {
  func.func @_mm_stats_kernel(%arg0: i32, %arg1: memref<512x27xbf16, #tpu.memory_space<vmem>>, %arg2: memref<27x32xbf16, #tpu.memory_space<vmem>>, %arg3: memref<1x32xf32, #tpu.memory_space<vmem>>, %arg4: memref<512x32xf32, #tpu.memory_space<vmem>>, %arg5: memref<1x1x32xf32, #tpu.memory_space<vmem>>, %arg6: memref<1x1x32xf32, #tpu.memory_space<vmem>>) attributes {dimension_semantics = [#tpu.dimension_semantics<parallel>], iteration_bounds = array<i64: 6>, scalar_prefetch = 0 : i64, scratch_operands = 0 : i64, tpu.core_type = #tpu.core_type<tc>, window_params = [{transform_indices = @transform_0, window_bounds = array<i64: 512, 27>}, {pipeline_mode = #tpu.pipeline_mode<synchronous>, transform_indices = @transform_1, window_bounds = array<i64: 27, 32>}, {pipeline_mode = #tpu.pipeline_mode<synchronous>, transform_indices = @transform_2, window_bounds = array<i64: 1, 32>}, {transform_indices = @transform_3, window_bounds = array<i64: 512, 32>}, {transform_indices = @transform_4, window_bounds = array<i64: 1, 1, 32>}, {transform_indices = @transform_5, window_bounds = array<i64: 1, 1, 32>}]} {
    %c0 = arith.constant 0 : index
    %c0_0 = arith.constant 0 : index
    %0 = vector.load %arg1[%c0, %c0_0] : memref<512x27xbf16, #tpu.memory_space<vmem>>, vector<512x27xbf16>
    %c0_1 = arith.constant 0 : index
    %c0_2 = arith.constant 0 : index
    %1 = vector.load %arg2[%c0_1, %c0_2] : memref<27x32xbf16, #tpu.memory_space<vmem>>, vector<27x32xbf16>
    %cst = arith.constant dense<0.000000e+00> : vector<512x32xf32>
    %2 = tpu.matmul %0, %1, %cst {dimension_numbers = #tpu.dot_dimension_numbers<[1], [0], [0], [1], [0, 0, 1, 1], [], []>} : vector<512x27xbf16>, vector<27x32xbf16>, vector<512x32xf32> -> vector<512x32xf32>
    %c0_3 = arith.constant 0 : index
    %c0_4 = arith.constant 0 : index
    %3 = vector.load %arg3[%c0_3, %c0_4] : memref<1x32xf32, #tpu.memory_space<vmem>>, vector<1x32xf32>
    %4 = vector.broadcast %3 : vector<1x32xf32> to vector<512x32xf32>
    %5 = arith.addf %2, %4 : vector<512x32xf32>
    %c0_5 = arith.constant 0 : index
    %c0_6 = arith.constant 0 : index
    %6 = vector.load %arg4[%c0_5, %c0_6] : memref<512x32xf32, #tpu.memory_space<vmem>>, vector<512x32xf32>
    tpu.vector_store %arg4[%c0_5, %c0_6], %5 {strides = array<i32>} : memref<512x32xf32, #tpu.memory_space<vmem>>, vector<512x32xf32>,
    %c512_i32 = arith.constant 512 : i32
    %7 = arith.muli %arg0, %c512_i32 : i32
    %8 = tpu.iota {dimensions = array<i32: 0>} : vector<512x1xi32>
    %9 = vector.broadcast %7 : i32 to vector<512x1xi32>
    %10 = arith.addi %9, %8 : vector<512x1xi32>
    %c2738_i32 = arith.constant 2738 : i32
    %11 = vector.broadcast %c2738_i32 : i32 to vector<512x1xi32>
    %12 = arith.cmpi slt, %10, %11 : vector<512x1xi32>
    %cst_7 = arith.constant 0.000000e+00 : f32
    %13 = vector.shape_cast %12 : vector<512x1xi1> to vector<512x1xi1>
    %14 = vector.broadcast %13 : vector<512x1xi1> to vector<512x32xi1>
    %15 = vector.broadcast %cst_7 : f32 to vector<512x32xf32>
    %16 = arith.select %14, %5, %15 : vector<512x32xi1>, vector<512x32xf32>
    %cst_8 = arith.constant dense<0.000000e+00> : vector<32xf32>
    %17 = vector.multi_reduction <add>, %16, %cst_8 [0] : vector<512x32xf32> to vector<32xf32>
    %18 = vector.shape_cast %17 : vector<32xf32> to vector<1x1x32xf32>
    %c0_9 = arith.constant 0 : index
    %c0_10 = arith.constant 0 : index
    %c0_11 = arith.constant 0 : index
    %19 = vector.load %arg5[%c0_9, %c0_10, %c0_11] : memref<1x1x32xf32, #tpu.memory_space<vmem>>, vector<1x1x32xf32>
    tpu.vector_store %arg5[%c0_9, %c0_10, %c0_11], %18 {strides = array<i32>} : memref<1x1x32xf32, #tpu.memory_space<vmem>>, vector<1x1x32xf32>,
    %20 = arith.mulf %16, %16 : vector<512x32xf32>
    %cst_12 = arith.constant dense<0.000000e+00> : vector<32xf32>
    %21 = vector.multi_reduction <add>, %20, %cst_12 [0] : vector<512x32xf32> to vector<32xf32>
    %22 = vector.shape_cast %21 : vector<32xf32> to vector<1x1x32xf32>
    %c0_13 = arith.constant 0 : index
    %c0_14 = arith.constant 0 : index
    %c0_15 = arith.constant 0 : index
    %23 = vector.load %arg6[%c0_13, %c0_14, %c0_15] : memref<1x1x32xf32, #tpu.memory_space<vmem>>, vector<1x1x32xf32>
    tpu.vector_store %arg6[%c0_13, %c0_14, %c0_15], %22 {strides = array<i32>} : memref<1x1x32xf32, #tpu.memory_space<vmem>>, vector<1x1x32xf32>,
    return
  }
  func.func @transform_0(%arg0: i32) -> (i32, i32) {
    %c0_i32 = arith.constant 0 : i32
    %c0_i32_0 = arith.constant 0 : i32
    return %arg0, %c0_i32 : i32, i32
  }
  func.func @transform_1(%arg0: i32) -> (i32, i32) {
    %c0_i32 = arith.constant 0 : i32
    %c0_i32_0 = arith.constant 0 : i32
    %c0_i32_1 = arith.constant 0 : i32
    return %c0_i32, %c0_i32_0 : i32, i32
  }
  func.func @transform_2(%arg0: i32) -> (i32, i32) {
    %c0_i32 = arith.constant 0 : i32
    %c0_i32_0 = arith.constant 0 : i32
    %c0_i32_1 = arith.constant 0 : i32
    return %c0_i32, %c0_i32_0 : i32, i32
  }
  func.func @transform_3(%arg0: i32) -> (i32, i32) {
    %c0_i32 = arith.constant 0 : i32
    %c0_i32_0 = arith.constant 0 : i32
    return %arg0, %c0_i32 : i32, i32
  }
  func.func @transform_4(%arg0: i32) -> (i32, i32, i32) {
    %c0_i32 = arith.constant 0 : i32
    %c0_i32_0 = arith.constant 0 : i32
    %c0_i32_1 = arith.constant 0 : i32
    return %arg0, %c0_i32, %c0_i32_0 : i32, i32, i32
  }
  func.func @transform_5(%arg0: i32) -> (i32, i32, i32) {
    %c0_i32 = arith.constant 0 : i32
    %c0_i32_0 = arith.constant 0 : i32
    %c0_i32_1 = arith.constant 0 : i32
    return %arg0, %c0_i32, %c0_i32_0 : i32, i32, i32
  }
}

</mosaic_0001>

<bundles_post_ra>
// kernel: tpu_custom_call.1
= control target key start
LH: loop header
LB: loop body
LE: loop exit
PB: predicated region body
PF: predicated region fallthrough
CT: control target
= control target key end

     0   :  { %11 = vsyncpa [#allocation3], 0  ;;  %s3616_s0 = inlined_call_operand.vmem [shape: bf16[3072,27], index: 0, kind: input, shape index: {}]   ;;  %s3617_s1 = inlined_call_operand.hbm [shape: bf16[27,32], index: 1, kind: input, shape index: {}]   ;;  %s3618_s2 = inlined_call_operand.hbm [shape: f32[1,32], index: 2, kind: input, shape index: {}]   ;;  %s3619_s3 = inlined_call_operand.vmem [shape: f32[3072,32], index: 3, kind: output, shape index: {0}]   ;;  %s3620_s4 = inlined_call_operand.hbm [shape: f32[6,1,32], index: 4, kind: output, shape index: {1}]   ;;  %s3621_s5 = inlined_call_operand.hbm [shape: f32[6,1,32], index: 5, kind: output, shape index: {2}]  }
   0x1   :  { %12 = vsyncpa [#allocation6], 0 }
   0x2   :  { %13 = vsyncpa [#allocation4], 0 }
   0x3   :  { %15 = vsyncpa [#allocation4 + $0x1], 0 }
   0x4   :  { %16 = vsyncpa [#allocation9], 0 }
   0x5   :  { %18 = vsyncpa [#allocation9 + $0x1], 0  ;;  %s2359_s18 = smov 0   ;;  %s2361_s19 = smov 0  }
   0x6   :  { %s2363_s20 = smov 0   ;;  %s2365_s21 = smov 0  }
   0x7 LB: > { %s2380_s22 = sadd.s32 4294967295, %s2320_s21   ;;  %s1869_s23 = sadd.s32 4294967294, %s2320_s21   ;;  %s2320_s21 = sphi %s2365_s21, %s3661_s21   ;;  %s2316_s20 = sphi %s2363_s20, %s3660_s20   ;;  %s2312_s19 = sphi %s2361_s19, %s3659_s19   ;;  %s2308_s18 = sphi %s2359_s18, %s3658_s18  }
   0x8   : > { %s2384_s24 = sadd.s32 1, %s2320_s21   ;;  %s125_s25 = sadd.s32 1, %s2316_s20 }
   0x9   : > { %s122_s26 = ssub.s32 %s2320_s21, %s2384_s24  ;;  %p135_p0 = scmp.ne.s32.totalorder %s2316_s20, %s2312_s19 }
   0xa   : > { %p123_p1 = scmp.eq.s32.totalorder %s122_s26, 0  ;;  %p136_p2 = scmp.eq.s32.totalorder %s2380_s22, 5 }
   0xb   : > { %p141_p3 = scmp.ne.s32.totalorder %s2312_s19, %s2308_s18  ;;  %p142_p4 = scmp.eq.s32.totalorder %s1869_s23, 5 }
   0xc   : > { %s2395_s27 = scalar_select %p123_p1, %s2316_s20, %s125_s25  }
   0xd   : > { %p2397_p5 = por %p136_p2, %p135_p0  ;;  %p2401_p6 = por %p142_p4, %p141_p3 }
   0xe   : > { %p1870_p7 = scmp.ge.s32.totalorder %s2320_s21, 1  ;;  %p175_p8 = scmp.lt.s32.totalorder %s2320_s21, 7 }
   0xf   : > { %s3629_s28 = scalar_select %p2397_p5, 1, 0 }
  0x10   : > { %s3630_s29 = scalar_select %p2401_p6, 1, 0 }
  0x11   : > { %p3622_p9 = scmp.eq.s32.totalorder %s2380_s22, 0  ;;  %p2408_p10 = pnand %p1870_p7, %p175_p8 }
  0x12   : > { %s2322_s6 = smov [#allocation2]   ;;  %s2323_s9 = smov [#allocation5]  }
  0x13   : > { %s3631_s30 = scalar_select %p2408_p10, 1, 0 }
  0x14   : > { %s187_s7 = sshll.u32 %s2322_s6, 4  ;;  %p2071_p11 = pneg %p2408_p10  ;;  %s188_s7 = int_to_ptr.vmem [resolvable:$true] %s187_s7 }
  0x15   : > { %s201_s10 = sshll.u32 %s2323_s9, 4  ;;  %s2162_s13 = scalar_lea.hbm %s3617_s1, 256  ;;  %s2420_s10 = int_to_ptr.vmem [resolvable:$true] %s201_s10 }
  0x16   : > { %p2416_p12 = pnand %p3622_p9, %p2071_p11  ;;  %p2163_p13 = scmp.ne.s32.totalorder %s3617_s1, %s2162_s13 }
  0x17   : > { %p2169_p3 = scmp.lt.u32.totalorder %s2162_s13, %s3617_s1 }
  0x18   : > { %p2164_p0 = pneg %p2416_p12 }
  0x1a   : > { %p2165_p1 = pnand %p2164_p0, %p2163_p13 }
  0x1c   : > { %p2166_p2 = pneg %p2165_p1 }
  0x1e   : > { %p2171_p4 = pnand %p2169_p3, %p2166_p2 }
  0x20   : > { %2174 = shalt.err (!%p2171_p4)
}
  0x21   : > { %s2175_s23 = scalar_lea.vmem %s188_s7, 256  ;;  %p2183_p9 = scmp.lt.s32.totalorder %s188_s7, %s188_s7 }
  0x22   : > { %p2176_p7 = scmp.ne.s32.totalorder %s188_s7, %s2175_s23  ;;  %p2184_p6 = scmp.lt.s32.totalorder %s2175_s23, %s2175_s23 }
  0x24   : > { %p2178_p8 = pnand %p2176_p7, %p2164_p0  ;;  %p2185_p5 = por %p2184_p6, %p2183_p9 }
  0x26   : > { %p2179_p11 = pneg %p2178_p8 }
  0x28   : > { %p2186_p10 = pnand %p2185_p5, %p2179_p11 }
  0x2a   : > { %2189 = shalt.err (!%p2186_p10)
}
  0x2b   : > { %s2324_s25 = smov 64   ;;  %s2325_s26 = smov 4  }
  0x2c   : > { %2074 = dma.hbm_to_vmem [thread:$0]  (!%p2416_p12), %s3617_s1, 256, %s188_s7, [#allocation3], %s2324_s25, %s2324_s25, %s2325_s26  }
  0x2d   : > { %s2190_s13 = scalar_lea.hbm %s3618_s2, 16 }
  0x2e   : > { %p2191_p13 = scmp.ne.s32.totalorder %s3618_s2, %s2190_s13  ;;  %p2197_p9 = scmp.lt.u32.totalorder %s2190_s13, %s3618_s2 }
  0x30   : > { %p2193_p5 = pnand %p2191_p13, %p2164_p0 }
  0x32   : > { %p2194_p6 = pneg %p2193_p5 }
  0x34   : > { %p2199_p10 = pnand %p2197_p9, %p2194_p6 }
  0x36   : > { %2202 = shalt.err (!%p2199_p10)
}
  0x37   : > { %s2203_s7 = scalar_lea.vmem %s2420_s10, 16  ;;  %s2210_s23 = scalar_lea.vmem %s2420_s10, 32 }
  0x38   : > { %p2204_p1 = scmp.ne.s32.totalorder %s2420_s10, %s2203_s7  ;;  %p2211_p4 = scmp.lt.s32.totalorder %s2420_s10, %s2420_s10 }
  0x39   : > { %p2212_p7 = scmp.lt.s32.totalorder %s2210_s23, %s2203_s7 }
  0x3a   : > { %p2206_p2 = pnand %p2204_p1, %p2164_p0 }
  0x3b   : > { %p2213_p8 = por %p2212_p7, %p2211_p4 }
  0x3c   : > { %p2207_p3 = pneg %p2206_p2 }
  0x3e   : > { %p2214_p11 = pnand %p2213_p8, %p2207_p3 }
  0x40   : > { %2217 = shalt.err (!%p2214_p11)
}
  0x41   : > { %2077 = dma.hbm_to_vmem [thread:$0]  (!%p2416_p12), %s3618_s2, 16, %s2420_s10, [#allocation6]  }
  0x42   : > { %p3633_p13 = scmp.ne.s32.totalorder %s3631_s30, 0 }
  0x44   : > { %223 = sbr.rel (%p3633_p13) target bundleno = 494 (0x1ee), region = 32 }
  0x4b   : > { %p3634_p0 = scmp.eq.s32.totalorder %s2380_s22, 0 }
  0x4d   : > { %2291 = dma.done.wait (%p3634_p0), [#allocation3], 256   ;;  %p3635_p5 = pmov %p3634_p0 }
  0x4e   : > { %p3636_p6 = pmov %p3634_p0 }
  0x4f   : > { %2293 = vsyncadd (%p3635_p5), [#allocation3], 4294967040 }
  0x50   : > { %2295 = dma.done.wait (%p3636_p6), [#allocation6], 16   ;;  %p3637_p9 = pmov %p3634_p0 }
  0x51   : > { %s1877_s8 = sshll.u32 %s2380_s22, 6  ;;  %vm619_vm0 = vcmask 1044480   ;;  %vm620_vm1 = vcmask 1045504   ;;  %v2326_v0 = vmov 65535   ;;  %vm522_vm2 = vcmask 220160   ;;  %v2127_v2 = vld [vmem:[#allocation2] sm:$0xff]  }
  0x52   : > { %2297 = vsyncadd (%p3637_p9), [#allocation6], 4294967280  ;;  %p264_p10 = scmp.lt.s32.totalorder %s1877_s8, 383  ;;  %v621_v1 = vsel %vm619_vm0, 4294967295, %v2326_v0  ;;  %v2128_v4 = vld [vmem:[#allocation2 + $0x8] sm:$0x3f]   ;;  %1987 = vmatprep.subr.bf16.mxu0 %v2127_v2  ;;  %2055 = vmatprep.subr.bf16.mxu1 %v2127_v2  ;;  %v981_v38 = vlaneseq }
  0x53   : > { %v622_v3 = vsel %vm620_vm1, %v621_v1, 0  ;;  %1988 = vmatpush3.bf16.msra.mxu0 %v2127_v2  ;;  %2057 = vmatpush3.bf16.msra.mxu1 %v2127_v2  ;;  %s1948_s11 = sshll.u32 %s2380_s22, 9  ;;  %vm915_vm3 = vcmask 261120   ;;  %s3530_s16 = sand.u32 1, %s2312_s19  }
  0x54   : > { %s3663_s8 = smov (!%p264_p10, %s1877_s8), 383  ;;  %v624_v6 = vand.u32 %v2128_v4, %v622_v3  ;;  %v2553_v39 = vshrl.u32 %v981_v38, 7  ;;  %v2557_v41 = vstv %s1948_s11  ;;  %s1949_s17 = sshll.u32 %s2380_s22, 4 }
  0x55   : > { %s1878_s30 = sshll.u32 %s3663_s8, 2  ;;  %s1880_s12 = sshll.u32 %s3663_s8, 3 }
  0x56   : > { %s2487_s9 = scalar_lea.vmem %s3616_s0, %s1878_s30  ;;  %1989 = vmatprep.subr.bf16.mxu0 %v624_v6  ;;  %2056 = vmatprep.subr.bf16.mxu1 %v624_v6  ;;  %v984_v40 = vadd.s32 16, %v2553_v39  ;;  %v985_v42 = vadd.s32 24, %v2553_v39  ;;  %v983_v43 = vadd.s32 8, %v2553_v39  ;;  %v988_v44 = vadd.s32 48, %v2553_v39  ;;  %s2669_s15 = scalar_lea.vmem %s3619_s3, %s1880_s12 }
  0x57   : > { %v2129_v5 = vld [vmem:[%s2487_s9] sm:$0xff]   ;;  %v2130_v7 = vld [vmem:[%s2487_s9 + $0x8] sm:$0xff]   ;;  %1990 = vmatpush3.bf16.msra.mxu0 %v624_v6  ;;  %v2131_v8 = vld [vmem:[%s2487_s9 + $0x10] sm:$0xff]   ;;  %2058 = vmatpush3.bf16.msra.mxu1 %v624_v6  ;;  %v986_v45 = vadd.s32 32, %v2553_v39  ;;  %v989_v46 = vadd.s32 56, %v2553_v39  ;;  %v987_v48 = vadd.s32 40, %v2553_v39  ;;  %v2572_v51 = vadd.s32 %v2557_v41, %v2553_v39  ;;  %s3540_s10 = scalar_lea.hbm %s3620_s4, %s1949_s17 }
  0x58   : > { %1991 = vmatprep.mubr.msk.bf16.mxu0 %vm522_vm2, %v2129_v5  ;;  %v2132_v9 = vld [vmem:[%s2487_s9 + $0x18] sm:$0xff]   ;;  %v2133_v10 = vld [vmem:[%s2487_s9 + $0x20] sm:$0xff]   ;;  %v2146_v12 = vld [vmem:[%s2487_s9 + $0x88] sm:$0xff]   ;;  %v2565_v47 = vadd.s32 %v2557_v41, %v984_v40  ;;  %v992_v49 = vadd.s32 80, %v2553_v39  ;;  %v990_v50 = vadd.s32 64, %v2553_v39  ;;  %v2575_v52 = vadd.s32 %v2557_v41, %v985_v42  ;;  %s256_s7 = scalar_lea.vmem [#allocation7], %s3530_s16 }
  0x59   : > { %v2145_v11 = vld [vmem:[%s2487_s9 + $0x80] sm:$0xff]   ;;  %v2147_v13 = vld [vmem:[%s2487_s9 + $0x90] sm:$0xff]   ;;  %v2134_v14 = vld [vmem:[%s2487_s9 + $0x28] sm:$0xff]   ;;  %v2578_v53 = vadd.s32 %v2557_v41, %v983_v43  ;;  %v993_v54 = vadd.s32 88, %v2553_v39  ;;  %v2582_v55 = vadd.s32 %v2557_v41, %v988_v44  ;;  %v991_v56 = vadd.s32 72, %v2553_v39  ;;  %s1726_s23 = sshll.u32 %s256_s7, 4  ;;  %s3542_s23 = int_to_ptr.vmem [resolvable:$true] %s1726_s23 }
  0x5a   : > { %1992 = vmatmul.mubr.msk.bf16.vlgmr.msra.gmra.mrb[0].mxu0 %vm522_vm2, %v2130_v7  ;;  %2023 = vmatprep.mubr.msk.bf16.mxu1 %vm522_vm2, %v2145_v11  ;;  %v2135_v15 = vld [vmem:[%s2487_s9 + $0x30] sm:$0xff]   ;;  %v2148_v16 = vld [vmem:[%s2487_s9 + $0x98] sm:$0xff]   ;;  %v2149_v17 = vld [vmem:[%s2487_s9 + $0xa0] sm:$0xff]   ;;  %v996_v57 = vadd.s32 112, %v2553_v39  ;;  %v994_v58 = vadd.s32 96, %v2553_v39  ;;  %v2588_v59 = vadd.s32 %v2557_v41, %v986_v45  ;;  %v2591_v60 = vadd.s32 %v2557_v41, %v989_v46  ;;  %s262_s25 = scalar_lea.vmem [#allocation8], %s3530_s16 }
  0x5b   : > { %1995 = vmatprep.mubr.msk.bf16.mxu0 %vm522_vm2, %v2131_v8  ;;  %2024 = vmatmul.mubr.msk.bf16.vlgmr.msra.gmra.mrb[0].mxu1 %vm522_vm2, %v2146_v12  ;;  %v2136_v18 = vld [vmem:[%s2487_s9 + $0x38] sm:$0xff]   ;;  %v2137_v19 = vld [vmem:[%s2487_s9 + $0x40] sm:$0xff]   ;;  %v2150_v20 = vld [vmem:[%s2487_s9 + $0xa8] sm:$0xff]   ;;  %v997_v61 = vadd.s32 120, %v2553_v39  ;;  %v995_v62 = vadd.s32 104, %v2553_v39  ;;  %v2596_v63 = vadd.s32 %v2557_v41, %v987_v48  ;;  %v2599_v0 = vadd.s32 %v2557_v41, %v992_v49  ;;  %s1739_s26 = sshll.u32 %s262_s25, 4  ;;  %s3550_s26 = int_to_ptr.vmem [resolvable:$true] %s1739_s26 }
  0x5c   : > { %2027 = vmatprep.mubr.msk.bf16.mxu1 %vm522_vm2, %v2147_v13  ;;  %v2151_v21 = vld [vmem:[%s2487_s9 + $0xb0] sm:$0xff]   ;;  %v2138_v22 = vld [vmem:[%s2487_s9 + $0x48] sm:$0xff]   ;;  %v2152_v24 = vld [vmem:[%s2487_s9 + $0xb8] sm:$0xff]   ;;  %v2602_v1 = vadd.s32 %v2557_v41, %v990_v50  ;;  %v1000_v2 = vadd.s32 144, %v2553_v39  ;;  %vm1113_vm4 = vcmp.lt.s32.totalorder %v2565_v47, 2738  ;;  %vm1111_vm5 = vcmp.lt.s32.totalorder %v2572_v51, 2738 }
  0x5d   : > { %v2139_v23 = vld [vmem:[%s2487_s9 + $0x50] sm:$0xff]   ;;  %v2153_v25 = vld [vmem:[%s2487_s9 + $0xc0] sm:$0xff]   ;;  %v2140_v26 = vld [vmem:[%s2487_s9 + $0x58] sm:$0xff]   ;;  %v2608_v3 = vadd.s32 %v2557_v41, %v993_v54  ;;  %v998_v4 = vadd.s32 128, %v2553_v39  ;;  %v1001_v5 = vadd.s32 152, %v2553_v39  ;;  %v999_v6 = vadd.s32 136, %v2553_v39 }
  0x5e   : > { %v2141_v27 = vld [vmem:[%s2487_s9 + $0x60] sm:$0xff]   ;;  %v2154_v28 = vld [vmem:[%s2487_s9 + $0xc8] sm:$0xff]   ;;  %v2155_v29 = vld [vmem:[%s2487_s9 + $0xd0] sm:$0xff]   ;;  %v2614_v7 = vadd.s32 %v2557_v41, %v991_v56  ;;  %v2617_v8 = vadd.s32 %v2557_v41, %v996_v57  ;;  %vm1114_vm6 = vcmp.lt.s32.totalorder %v2575_v52, 2738  ;;  %vm1112_vm7 = vcmp.lt.s32.totalorder %v2578_v53, 2738  ;;  %s1706_s11 = scalar_lea.sflag [#allocation4], %s3530_s16 }
  0x5f   : > { %v2142_v30 = vld [vmem:[%s2487_s9 + $0x68] sm:$0xff]   ;;  %v2143_v31 = vld [vmem:[%s2487_s9 + $0x70] sm:$0xff]   ;;  %v2156_v32 = vld [vmem:[%s2487_s9 + $0xd8] sm:$0xff]   ;;  %v2626_v11 = vadd.s32 %v2557_v41, %v997_v61  ;;  %v2629_v12 = vadd.s32 %v2557_v41, %v995_v62  ;;  %v1002_v13 = vadd.s32 160, %v2553_v39  ;;  %vm1115_vm8 = vcmp.lt.s32.totalorder %v2588_v59, 2738  ;;  %s2218_s12 = scalar_lea.vmem %s3542_s23, 16 }
  0x60   : > { %v2157_v33 = vld [vmem:[%s2487_s9 + $0xe0] sm:$0xff]   ;;  %v2144_v34 = vld [vmem:[%s2487_s9 + $0x78] sm:$0xff]   ;;  %v2158_v35 = vld [vmem:[%s2487_s9 + $0xe8] sm:$0xff]   ;;  %v1014_v42 = vadd.s32 256, %v2553_v39  ;;  %v1017_v43 = vadd.s32 280, %v2553_v39  ;;  %vm1117_vm9 = vcmp.lt.s32.totalorder %v2582_v55, 2738  ;;  %p2219_p12 = scmp.ne.s32.totalorder %s3542_s23, %s2218_s12 }
  0x61   : > { %v2159_v36 = vld [vmem:[%s2487_s9 + $0xf0] sm:$0xff]   ;;  %v2160_v37 = vld [vmem:[%s2487_s9 + $0xf8] sm:$0xff]   ;;  %v1020_v47 = vadd.s32 304, %v2553_v39  ;;  %vm1118_vm10 = vcmp.lt.s32.totalorder %v2591_v60, 2738  ;;  %vm1116_vm11 = vcmp.lt.s32.totalorder %v2596_v63, 2738  ;;  %vm1119_vm12 = vcmp.lt.s32.totalorder %v2602_v1, 2738  ;;  %s3548_s9 = scalar_lea.hbm %s3621_s5, %s1949_s17 }
  0x62   : > { %1996 = vmatmul.mubr.msk.bf16.gmra.mrb[4].mxu0 %vm522_vm2, %v2132_v9  ;;  %v2620_v9 = vadd.s32 %v2557_v41, %v994_v58  ;;  %v1015_v58 = vadd.s32 264, %v2553_v39  ;;  %vm1121_vm13 = vcmp.lt.s32.totalorder %v2599_v0, 2738  ;;  %vm1122_vm14 = vcmp.lt.s32.totalorder %v2608_v3, 2738  ;;  %p3656_p1 = scmp.ne.s32.totalorder %s3629_s28, 0  ;;  %s2327_s13 = smov [#allocation7]  }
  0x63   : > { %1999 = vmatprep.mubr.msk.bf16.mxu0 %vm522_vm2, %v2133_v10  ;;  %2028 = vmatmul.mubr.msk.bf16.gmra.mrb[4].mxu1 %vm522_vm2, %v2148_v16  ;;  %v1004_v10 = vadd.s32 176, %v2553_v39  ;;  %v1003_v16 = vadd.s32 168, %v2553_v39  ;;  %vm1120_vm15 = vcmp.lt.s32.totalorder %v2614_v7, 2738  ;;  %vm1124_vm1 = vcmp.lt.s32.totalorder %v2629_v12, 2738  ;;  %s2222_s14 = sshll.u32 %s2327_s13, 4  ;;  %s2223_s14 = int_to_ptr.vmem [resolvable:$false] %s2222_s14 }
  0x64   : > { %2031 = vmatprep.mubr.msk.bf16.mxu1 %vm522_vm2, %v2149_v17  ;;  %v1008_v17 = vadd.s32 208, %v2553_v39  ;;  %v2742_v53 = vadd.s32 %v2557_v41, %v1015_v58  ;;  %vm1123_vm0 = vcmp.lt.s32.totalorder %v2620_v9, 2738  ;;  %p2220_p2 = pnand %p2219_p12, %p3656_p1  ;;  %p2225_p4 = scmp.lt.s32.totalorder %s3542_s23, %s2223_s14 }
  0x66   : > { %p2221_p3 = pneg %p2220_p2 }
  0x6a   : > { %2000 = vmatmul.mubr.msk.bf16.gmra.mrb[8].mxu0 %vm522_vm2, %v2134_v14  ;;  %v1005_v14 = vadd.s32 184, %v2553_v39 }
  0x6b   : > { %2003 = vmatprep.mubr.msk.bf16.mxu0 %vm522_vm2, %v2135_v15  ;;  %2032 = vmatmul.mubr.msk.bf16.gmra.mrb[8].mxu1 %vm522_vm2, %v2150_v20  ;;  %v2634_v15 = vadd.s32 %v2557_v41, %v1000_v2  ;;  %v2644_v20 = vadd.s32 %v2557_v41, %v1001_v5 }
  0x6c   : > { %2035 = vmatprep.mubr.msk.bf16.mxu1 %vm522_vm2, %v2151_v21  ;;  %v2647_v21 = vadd.s32 %v2557_v41, %v999_v6  ;;  %v2722_v6 = vadd.s32 %v2557_v41, %v1014_v42 }
  0x72   : > { %2004 = vmatmul.mubr.msk.bf16.gmra.mrb[12].mxu0 %vm522_vm2, %v2136_v18  ;;  %v1006_v18 = vadd.s32 192, %v2553_v39 }
  0x73   : > { %2007 = vmatprep.mubr.msk.bf16.mxu0 %vm522_vm2, %v2137_v19  ;;  %2036 = vmatmul.mubr.msk.bf16.gmra.mrb[12].mxu1 %vm522_vm2, %v2152_v24  ;;  %v2641_v19 = vadd.s32 %v2557_v41, %v998_v4  ;;  %v2653_v24 = vadd.s32 %v2557_v41, %v1004_v10  ;;  %v2725_v10 = vadd.s32 %v2557_v41, %v1017_v43 }
  0x74   : > { %2039 = vmatprep.mubr.msk.bf16.mxu1 %vm522_vm2, %v2153_v25  ;;  %v1007_v25 = vadd.s32 200, %v2553_v39 }
  0x76   : > { %v2690_v46 = vadd.s32 %v2557_v41, %v1007_v25 }
  0x7a   : > { %2008 = vmatmul.mubr.msk.bf16.gmra.mrb[16].mxu0 %vm522_vm2, %v2138_v22  ;;  %v1009_v22 = vadd.s32 216, %v2553_v39 }
  0x7b   : > { %2011 = vmatprep.mubr.msk.bf16.mxu0 %vm522_vm2, %v2139_v23  ;;  %2040 = vmatmul.mubr.msk.bf16.gmra.mrb[16].mxu1 %vm522_vm2, %v2154_v28  ;;  %v2650_v23 = vld [vmem:[#allocation5] ss:$0 sm:$0xff]  ;;  %v2659_v28 = vadd.s32 %v2557_v41, %v1002_v13 }
  0x7c   : > { %2043 = vmatprep.mubr.msk.bf16.mxu1 %vm522_vm2, %v2155_v29  ;;  %v2662_v29 = vadd.s32 %v2557_v41, %v1005_v14  ;;  %v2684_v40 = vadd.s32 %v2557_v41, %v1009_v22  ;;  %v1018_v14 = vadd.s32 288, %v2553_v39 }
  0x82   : > { %2012 = vmatmul.mubr.msk.bf16.gmra.mrb[20].mxu0 %vm522_vm2, %v2140_v26  ;;  %v1012_v26 = vadd.s32 240, %v2553_v39 }
  0x83   : > { %2015 = vmatprep.mubr.msk.bf16.mxu0 %vm522_vm2, %v2141_v27  ;;  %2044 = vmatmul.mubr.msk.bf16.gmra.mrb[20].mxu1 %vm522_vm2, %v2156_v32  ;;  %v1010_v27 = vadd.s32 224, %v2553_v39 }
  0x84   : > { %2047 = vmatprep.mubr.msk.bf16.mxu1 %vm522_vm2, %v2157_v33  ;;  %v2672_v33 = vadd.s32 %v2557_v41, %v1003_v16  ;;  %v2693_v48 = vadd.s32 %v2557_v41, %v1012_v26  ;;  %v1021_v16 = vadd.s32 312, %v2553_v39 }
  0x85   : > { %v2696_v49 = vadd.s32 %v2557_v41, %v1010_v27 }
  0x8a   : > { %2016 = vmatmul.mubr.msk.bf16.gmra.mrb[24].mxu0 %vm522_vm2, %v2142_v30  ;;  %v1013_v30 = vadd.s32 248, %v2553_v39 }
  0x8b   : > { %2019 = vmatprep.mubr.msk.bf16.mxu0 %vm522_vm2, %v2143_v31  ;;  %2048 = vmatmul.mubr.msk.bf16.gmra.mrb[24].mxu1 %vm522_vm2, %v2158_v35  ;;  %v1011_v31 = vadd.s32 232, %v2553_v39  ;;  %v2678_v35 = vadd.s32 %v2557_v41, %v1006_v18 }
  0x8c   : > { %2051 = vmatprep.mubr.msk.bf16.mxu1 %vm522_vm2, %v2159_v36  ;;  %v1016_v36 = vadd.s32 272, %v2553_v39  ;;  %v2703_v56 = vadd.s32 %v2557_v41, %v1013_v30  ;;  %v1019_v30 = vadd.s32 296, %v2553_v39 }
  0x8d   : > { %v2706_v57 = vadd.s32 %v2557_v41, %v1011_v31 }
  0x8e   : > { %v2717_v4 = vadd.s32 %v2557_v41, %v1016_v36 }
  0x92   : > { %2020 = vmatmul.mubr.msk.bf16.gmra.mrb[28].mxu0 %vm522_vm2, %v2144_v34  ;;  %v2675_v34 = vadd.s32 %v2557_v41, %v1008_v17 }
  0x93   : > { %2052 = vmatmul.mubr.msk.bf16.gmra.mrb[28].mxu1 %vm522_vm2, %v2160_v37  ;;  %vm1125_vm2 = vcmp.lt.s32.totalorder %v2617_v8, 2738  ;;  %v1026_v8 = vadd.s32 352, %v2553_v39 }
 0x12d   : > { %v1993_v32 = vpop.f32.mrb[0].mxu0 }
 0x12e   : > { %v669_v37 = vadd.f32 %v1993_v32, %v2650_v23  ;;  %v660_v38 = vpop.f32.mrb[1].mxu0 }
 0x12f   : > { %v661_v44 = vadd.f32 %v2650_v23, %v660_v38  ;;  %v1994_v45 = vpop.f32.mrb[2].mxu0 }
 0x130   : > { %918 = vst.msk [vmem:[%s2669_s15 + $0x10] sm:$0xff] %vm915_vm3, %v669_v37  ;;  %v672_v50 = vadd.f32 %v1994_v45, %v2650_v23  ;;  %v663_v54 = vpop.f32.mrb[3].mxu0  ;;  %v1305_v61 = vsel %vm1113_vm4, %v669_v37, 0.0  ;;  %vm1126_vm4 = vcmp.lt.s32.totalorder %v2626_v11, 2738 }
 0x131   : > { %916 = vst.msk [vmem:[%s2669_s15] sm:$0xff] %vm915_vm3, %v661_v44  ;;  %v1303_v62 = vsel %vm1111_vm5, %v661_v44, 0.0  ;;  %v664_v2 = vadd.f32 %v2650_v23, %v663_v54  ;;  %v1504_v17 = vmul.f32 %v1305_v61, %v1305_v61  ;;  %v1370_v25 = vsel %vm915_vm3, %v1305_v61, 0.0 }
 0x132   : > { %v1502_v5 = vmul.f32 %v1303_v62, %v1303_v62  ;;  %919 = vst.msk [vmem:[%s2669_s15 + $0x18] sm:$0xff] %vm915_vm3, %v672_v50  ;;  %v1306_v51 = vsel %vm1114_vm6, %v672_v50, 0.0  ;;  %v1367_v18 = vsel %vm915_vm3, %v1303_v62, 0.0  ;;  %v2752_v50 = vadd.s32 %v2557_v41, %v1020_v47  ;;  %v2025_v62 = vpop.f32.mrb[0].mxu1 }
 0x133   : > { %917 = vst.msk [vmem:[%s2669_s15 + $0x8] sm:$0xff] %vm915_vm3, %v664_v2  ;;  %v1304_v13 = vsel %vm1112_vm7, %v664_v2, 0.0  ;;  %v1505_v32 = vmul.f32 %v1306_v51, %v1306_v51  ;;  %v1569_v54 = vsel %vm915_vm3, %v1504_v17, 0.0  ;;  %v2759_v2 = vadd.s32 %v2557_v41, %v1018_v14  ;;  %v788_v17 = vpop.f32.mrb[1].mxu1 }
 0x134   : > { %v1368_v22 = vsel %vm915_vm3, %v1304_v13, 0.0  ;;  %v1503_v52 = vmul.f32 %v1304_v13, %v1304_v13  ;;  %v1566_v31 = vsel %vm915_vm3, %v1502_v5, 0.0  ;;  %v2762_v5 = vadd.s32 %v2557_v41, %v1021_v16 }
 0x135   : > { %v1369_v26 = vadd.f32 %v1368_v22, %v1367_v18  ;;  %v1997_v27 = vpop.f32.mrb[4].mxu0  ;;  %v1372_v13 = vsel %vm915_vm3, %v1306_v51, 0.0  ;;  %v2771_v22 = vadd.s32 %v2557_v41, %v1019_v30  ;;  %v1571_v14 = vsel %vm915_vm3, %v1505_v32, 0.0  ;;  %v2026_v51 = vpop.f32.mrb[2].mxu1 }
 0x136   : > { %v1567_v36 = vsel %vm915_vm3, %v1503_v52, 0.0  ;;  %v685_v37 = vadd.f32 %v1997_v27, %v2650_v23  ;;  %v676_v38 = vpop.f32.mrb[5].mxu0  ;;  %v791_v27 = vpop.f32.mrb[3].mxu1  ;;  %v1024_v30 = vadd.s32 336, %v2553_v39  ;;  %v2788_v55 = vadd.f32 %v2650_v23, %v788_v17 }
 0x137   : > { %v1371_v42 = vadd.f32 %v1370_v25, %v1369_v26  ;;  %v1568_v43 = vadd.f32 %v1567_v36, %v1566_v31  ;;  %v677_v44 = vadd.f32 %v2650_v23, %v676_v38  ;;  %v1998_v45 = vpop.f32.mrb[6].mxu0  ;;  %v1022_v31 = vadd.s32 320, %v2553_v39 }
 0x138   : > { %922 = vst.msk [vmem:[%s2669_s15 + $0x30] sm:$0xff] %vm915_vm3, %v685_v37  ;;  %v688_v58 = vadd.f32 %v1998_v45, %v2650_v23  ;;  %v679_v61 = vpop.f32.mrb[7].mxu0  ;;  %v1309_v59 = vsel %vm1117_vm9, %v685_v37, 0.0  ;;  %v2791_v37 = vadd.f32 %v2026_v51, %v2650_v23  ;;  %v2794_v45 = vadd.s32 344, %v2553_v39  ;;  %948 = vst.msk [vmem:[%s2669_s15 + $0x100] sm:$0xff] %vm915_vm3, %v2788_v55 }
 0x139   : > { %v1570_v18 = vadd.f32 %v1569_v54, %v1568_v43  ;;  %920 = vst.msk [vmem:[%s2669_s15 + $0x20] sm:$0xff] %vm915_vm3, %v677_v44  ;;  %v1307_v47 = vsel %vm1115_vm8, %v677_v44, 0.0  ;;  %v1373_v52 = vadd.f32 %v1372_v13, %v1371_v42  ;;  %v680_v38 = vadd.f32 %v2650_v23, %v679_v61 }
 0x13a   : > { %v1374_v16 = vsel %vm915_vm3, %v1307_v47, 0.0  ;;  %v1506_v25 = vmul.f32 %v1307_v47, %v1307_v47  ;;  %923 = vst.msk [vmem:[%s2669_s15 + $0x38] sm:$0xff] %vm915_vm3, %v688_v58  ;;  %v2785_v42 = vadd.f32 %v2025_v62, %v2650_v23  ;;  %v1310_v54 = vsel %vm1118_vm10, %v688_v58, 0.0  ;;  %951 = vst.msk [vmem:[%s2669_s15 + $0x118] sm:$0xff] %vm915_vm3, %v2791_v37 }
 0x13b   : > { %v1572_v26 = vadd.f32 %v1571_v14, %v1570_v18  ;;  %v1375_v32 = vadd.f32 %v1374_v16, %v1373_v52  ;;  %921 = vst.msk [vmem:[%s2669_s15 + $0x28] sm:$0xff] %vm915_vm3, %v680_v38  ;;  %v1308_v61 = vsel %vm1116_vm11, %v680_v38, 0.0  ;;  %v2808_v18 = vadd.f32 %v2650_v23, %v791_v27 }
 0x13c   : > { %v1573_v36 = vsel %vm915_vm3, %v1506_v25, 0.0  ;;  %950 = vst.msk [vmem:[%s2669_s15 + $0x110] sm:$0xff] %vm915_vm3, %v2785_v42  ;;  %v1508_v60 = vmul.f32 %v1309_v59, %v1309_v59  ;;  %v1376_v58 = vsel %vm915_vm3, %v1308_v61, 0.0  ;;  %v1507_v47 = vmul.f32 %v1308_v61, %v1308_v61  ;;  %v2825_v25 = vpop.f32.mrb[4].mxu1 }
 0x13d   : > { %v1574_v43 = vadd.f32 %v1573_v36, %v1572_v26  ;;  %v2001_v44 = vpop.f32.mrb[8].mxu0  ;;  %v1377_v14 = vadd.f32 %v1376_v58, %v1375_v32  ;;  %949 = vst.msk [vmem:[%s2669_s15 + $0x108] sm:$0xff] %vm915_vm3, %v2808_v18  ;;  %v2828_v51 = vadd.s32 %v2557_v41, %v1024_v30  ;;  %v1023_v26 = vadd.s32 328, %v2553_v39 }
 0x13e   : > { %v701_v62 = vadd.f32 %v2001_v44, %v2650_v23  ;;  %v692_v13 = vpop.f32.mrb[9].mxu0  ;;  %v1378_v27 = vsel %vm915_vm3, %v1309_v59, 0.0  ;;  %v1509_v32 = vmul.f32 %v1310_v54, %v1310_v54  ;;  %v1575_v36 = vsel %vm915_vm3, %v1507_v47, 0.0  ;;  %v2838_v44 = vpop.f32.mrb[5].mxu1 }
 0x13f   : > { %v693_v17 = vadd.f32 %v2650_v23, %v692_v13  ;;  %v2002_v63 = vpop.f32.mrb[10].mxu0  ;;  %3638 = vst [vmem:[#allocation14_spill] sm:$0xff] %v2828_v51  ;;  %v1379_v61 = vadd.f32 %v1378_v27, %v1377_v14  ;;  %v1576_v13 = vadd.f32 %v1575_v36, %v1574_v43  ;;  %v2845_v59 = vpop.f32.mrb[6].mxu1  ;;  %v1577_v1 = vsel %vm915_vm3, %v1508_v60, 0.0 }
 0x140   : > { %926 = vst.msk [vmem:[%s2669_s15 + $0x50] sm:$0xff] %vm915_vm3, %v701_v62  ;;  %v704_v52 = vadd.f32 %v2002_v63, %v2650_v23  ;;  %v695_v16 = vpop.f32.mrb[11].mxu0  ;;  %v1313_v30 = vsel %vm1121_vm13, %v701_v62, 0.0  ;;  %v1380_v47 = vsel %vm915_vm3, %v1310_v54, 0.0  ;;  %v2851_v43 = vpop.f32.mrb[7].mxu1  ;;  %v2856_v27 = vadd.s32 %v2557_v41, %v1022_v31 }
 0x141   : > { %924 = vst.msk [vmem:[%s2669_s15 + $0x40] sm:$0xff] %vm915_vm3, %v693_v17  ;;  %v1311_v38 = vsel %vm1119_vm12, %v693_v17, 0.0  ;;  %v696_v63 = vadd.f32 %v2650_v23, %v695_v16  ;;  %v1578_v0 = vadd.f32 %v1577_v1, %v1576_v13  ;;  %v1381_v62 = vadd.f32 %v1380_v47, %v1379_v61 }
 0x142   : > { %v1510_v58 = vmul.f32 %v1311_v38, %v1311_v38  ;;  %927 = vst.msk [vmem:[%s2669_s15 + $0x58] sm:$0xff] %vm915_vm3, %v704_v52  ;;  %v1382_v17 = vsel %vm915_vm3, %v1311_v38, 0.0  ;;  %v1314_v14 = vsel %vm1122_vm14, %v704_v52, 0.0  ;;  %v1579_v36 = vsel %vm915_vm3, %v1509_v32, 0.0 }
 0x143   : > { %v1512_v51 = vmul.f32 %v1313_v30, %v1313_v30  ;;  %925 = vst.msk [vmem:[%s2669_s15 + $0x48] sm:$0xff] %vm915_vm3, %v696_v63  ;;  %v1312_v54 = vsel %vm1120_vm15, %v696_v63, 0.0  ;;  %v1383_v38 = vadd.f32 %v1382_v17, %v1381_v62  ;;  %v1580_v13 = vadd.f32 %v1579_v36, %v1578_v0  ;;  %v2875_v36 = vpop.f32.mrb[8].mxu1 }
 0x144   : > { %v1581_v60 = vsel %vm915_vm3, %v1510_v58, 0.0  ;;  %v1384_v61 = vsel %vm915_vm3, %v1312_v54, 0.0  ;;  %v1511_v3 = vmul.f32 %v1312_v54, %v1312_v54  ;;  %vm1127_vm5 = vcmp.lt.s32.totalorder %v2641_v19, 2738 }
 0x145   : > { %v2005_v16 = vpop.f32.mrb[12].mxu0  ;;  %v1513_v31 = vmul.f32 %v1314_v14, %v1314_v14  ;;  %v2870_v7 = vadd.s32 %v2557_v41, %v2794_v45  ;;  %v1582_v47 = vadd.f32 %v1581_v60, %v1580_v13  ;;  %v1385_v17 = vadd.f32 %v1384_v61, %v1383_v38 }
 0x146   : > { %v708_v52 = vpop.f32.mrb[13].mxu0  ;;  %v717_v32 = vadd.f32 %v2005_v16, %v2650_v23  ;;  %v1583_v63 = vsel %vm915_vm3, %v1511_v3, 0.0  ;;  %vm1128_vm6 = vcmp.lt.s32.totalorder %v2647_v21, 2738  ;;  %v1386_v54 = vsel %vm915_vm3, %v1313_v30, 0.0  ;;  %v2886_v16 = vpop.f32.mrb[9].mxu1 }
 0x147   : > { %v709_v58 = vadd.f32 %v2650_v23, %v708_v52  ;;  %v2006_v1 = vpop.f32.mrb[14].mxu0  ;;  %3639 = vst [vmem:[#allocation15_spill] sm:$0xff] %v2870_v7  ;;  %vm1129_vm7 = vcmp.lt.s32.totalorder %v2634_v15, 2738  ;;  %v2889_v38 = vadd.s32 %v2557_v41, %v1023_v26  ;;  %v1585_v13 = vsel %vm915_vm3, %v1512_v51, 0.0  ;;  %v2895_v9 = vpop.f32.mrb[10].mxu1 }
 0x148   : > { %v720_v0 = vadd.f32 %v2006_v1, %v2650_v23  ;;  %v711_v62 = vpop.f32.mrb[15].mxu0  ;;  %930 = vst.msk [vmem:[%s2669_s15 + $0x70] sm:$0xff] %vm915_vm3, %v717_v32  ;;  %v1387_v30 = vadd.f32 %v1386_v54, %v1385_v17  ;;  %v1584_v61 = vadd.f32 %v1583_v63, %v1582_v47  ;;  %vm1130_vm8 = vcmp.lt.s32.totalorder %v2644_v20, 2738  ;;  %v2904_v26 = vpop.f32.mrb[11].mxu1 }
 0x149   : > { %928 = vst.msk [vmem:[%s2669_s15 + $0x60] sm:$0xff] %vm915_vm3, %v709_v58  ;;  %v1315_v45 = vsel %vm1123_vm0, %v709_v58, 0.0  ;;  %v712_v60 = vadd.f32 %v2650_v23, %v711_v62  ;;  %3640 = vst [vmem:[#allocation16_spill] sm:$0xff] %v2889_v38  ;;  %v1028_v3 = vadd.s32 368, %v2553_v39  ;;  %v1388_v52 = vsel %vm915_vm3, %v1314_v14, 0.0 }
 0x14a   : > { %931 = vst.msk [vmem:[%s2669_s15 + $0x78] sm:$0xff] %vm915_vm3, %v720_v0  ;;  %v1390_v58 = vsel %vm915_vm3, %v1315_v45, 0.0  ;;  %v1514_v1 = vmul.f32 %v1315_v45, %v1315_v45  ;;  %3641 = vst [vmem:[#allocation17_spill] sm:$0xff] %v2904_v26  ;;  %v1587_v47 = vsel %vm915_vm3, %v1513_v31, 0.0  ;;  %v1586_v17 = vadd.f32 %v1585_v13, %v1584_v61 }
 0x14b   : > { %929 = vst.msk [vmem:[%s2669_s15 + $0x68] sm:$0xff] %vm915_vm3, %v712_v60  ;;  %v1316_v51 = vsel %vm1124_vm1, %v712_v60, 0.0  ;;  %v1317_v63 = vsel %vm1125_vm2, %v717_v32, 0.0  ;;  %v1389_v62 = vadd.f32 %v1388_v52, %v1387_v30  ;;  %v1318_v14 = vsel %vm1126_vm4, %v720_v0, 0.0 }
 0x14c   : > { %v1589_v54 = vsel %vm915_vm3, %v1514_v1, 0.0  ;;  %v1392_v45 = vsel %vm915_vm3, %v1316_v51, 0.0  ;;  %v1515_v7 = vmul.f32 %v1316_v51, %v1316_v51  ;;  %v1588_v38 = vadd.f32 %v1587_v47, %v1586_v17  ;;  %v2923_v47 = vpop.f32.mrb[12].mxu1 }
 0x14d   : > { %v2009_v12 = vpop.f32.mrb[16].mxu0  ;;  %v1391_v60 = vadd.f32 %v1390_v58, %v1389_v62  ;;  %vm1131_vm9 = vcmp.lt.s32.totalorder %v2659_v28, 2738  ;;  %v1516_v32 = vmul.f32 %v1317_v63, %v1317_v63  ;;  %v1029_v30 = vadd.s32 376, %v2553_v39  ;;  %v2932_v62 = vpop.f32.mrb[13].mxu1 }
 0x14e   : > { %v733_v26 = vadd.f32 %v2009_v12, %v2650_v23  ;;  %v724_v31 = vpop.f32.mrb[17].mxu0  ;;  %v1591_v13 = vsel %vm915_vm3, %v1515_v7, 0.0  ;;  %v1590_v61 = vadd.f32 %v1589_v54, %v1588_v38  ;;  %v1517_v52 = vmul.f32 %v1318_v14, %v1318_v14  ;;  %v2941_v19 = vpop.f32.mrb[14].mxu1 }
 0x14f   : > { %v725_v11 = vadd.f32 %v2650_v23, %v724_v31  ;;  %v2010_v0 = vpop.f32.mrb[18].mxu0  ;;  %v1393_v58 = vadd.f32 %v1392_v45, %v1391_v60  ;;  %vm1132_vm10 = vcmp.lt.s32.totalorder %v2672_v33, 2738  ;;  %v1394_v7 = vsel %vm915_vm3, %v1317_v63, 0.0  ;;  %3643 = vst [vmem:[#allocation19_spill] sm:$0xff] %v2941_v19 }
 0x150   : > { %934 = vst.msk [vmem:[%s2669_s15 + $0x90] sm:$0xff] %vm915_vm3, %v733_v26  ;;  %v736_v1 = vadd.f32 %v2010_v0, %v2650_v23  ;;  %v727_v51 = vpop.f32.mrb[19].mxu0  ;;  %vm1133_vm11 = vcmp.lt.s32.totalorder %v2653_v24, 2738  ;;  %v1027_v54 = vadd.s32 360, %v2553_v39  ;;  %v1592_v12 = vadd.f32 %v1591_v13, %v1590_v61  ;;  %v2950_v61 = vpop.f32.mrb[15].mxu1 }
 0x151   : > { %932 = vst.msk [vmem:[%s2669_s15 + $0x80] sm:$0xff] %vm915_vm3, %v725_v11  ;;  %v1319_v38 = vsel %vm1127_vm5, %v725_v11, 0.0  ;;  %v728_v17 = vadd.f32 %v2650_v23, %v727_v51  ;;  %v1395_v45 = vadd.f32 %v1394_v7, %v1393_v58  ;;  %vm1134_vm12 = vcmp.lt.s32.totalorder %v2662_v29, 2738  ;;  %3644 = vst [vmem:[#allocation20_spill] sm:$0xff] %v2950_v61 }
 0x152   : > { %v1518_v60 = vmul.f32 %v1319_v38, %v1319_v38  ;;  %935 = vst.msk [vmem:[%s2669_s15 + $0x98] sm:$0xff] %vm915_vm3, %v736_v1  ;;  %v2939_v63 = vadd.s32 %v2557_v41, %v1028_v3  ;;  %v1593_v31 = vsel %vm915_vm3, %v1516_v32, 0.0  ;;  %v1396_v11 = vsel %vm915_vm3, %v1318_v14, 0.0 }
 0x153   : > { %v1398_v0 = vsel %vm915_vm3, %v1319_v38, 0.0  ;;  %933 = vst.msk [vmem:[%s2669_s15 + $0x88] sm:$0xff] %vm915_vm3, %v728_v17  ;;  %v1320_v13 = vsel %vm1128_vm6, %v728_v17, 0.0  ;;  %v1595_v58 = vsel %vm915_vm3, %v1517_v52, 0.0  ;;  %v1594_v51 = vadd.f32 %v1593_v31, %v1592_v12 }
 0x154   : > { %3642 = vst [vmem:[#allocation18_spill] sm:$0xff] %v2939_v63  ;;  %v1321_v3 = vsel %vm1129_vm7, %v733_v26, 0.0  ;;  %v1397_v7 = vadd.f32 %v1396_v11, %v1395_v45  ;;  %v1597_v32 = vsel %vm915_vm3, %v1518_v60, 0.0  ;;  %v1322_v14 = vsel %vm1130_vm8, %v736_v1, 0.0 }
 0x155   : > { %v1400_v38 = vsel %vm915_vm3, %v1320_v13, 0.0  ;;  %v1519_v63 = vmul.f32 %v1320_v13, %v1320_v13  ;;  %v2013_v21 = vpop.f32.mrb[20].mxu0  ;;  %v1596_v19 = vadd.f32 %v1595_v58, %v1594_v51  ;;  %vm1135_vm13 = vcmp.lt.s32.totalorder %v2678_v35, 2738 }
 0x156   : > { %v1399_v17 = vadd.f32 %v1398_v0, %v1397_v7  ;;  %v749_v61 = vadd.f32 %v2013_v21, %v2650_v23  ;;  %v740_v52 = vpop.f32.mrb[21].mxu0  ;;  %v2962_v15 = vadd.s32 %v2557_v41, %v1026_v8  ;;  %v1520_v26 = vmul.f32 %v1321_v3, %v1321_v3  ;;  %v2973_v8 = vpop.f32.mrb[16].mxu1 }
 0x157   : > { %v1599_v20 = vsel %vm915_vm3, %v1519_v63, 0.0  ;;  %v741_v1 = vadd.f32 %v2650_v23, %v740_v52  ;;  %v2014_v45 = vpop.f32.mrb[22].mxu0  ;;  %v2967_v12 = vadd.s32 %v2557_v41, %v1029_v30  ;;  %v1598_v60 = vadd.f32 %v1597_v32, %v1596_v19  ;;  %v2985_v51 = vpop.f32.mrb[17].mxu1 }
 0x158   : > { %v1521_v31 = vmul.f32 %v1322_v14, %v1322_v14  ;;  %v1401_v11 = vadd.f32 %v1400_v38, %v1399_v17  ;;  %938 = vst.msk [vmem:[%s2669_s15 + $0xb0] sm:$0xff] %vm915_vm3, %v749_v61  ;;  %v752_v0 = vadd.f32 %v2014_v45, %v2650_v23  ;;  %v743_v13 = vpop.f32.mrb[23].mxu0  ;;  %vm1136_vm14 = vcmp.lt.s32.totalorder %v2690_v46, 2738  ;;  %v2992_v21 = vpop.f32.mrb[18].mxu1 }
 0x159   : > { %v1402_v63 = vsel %vm915_vm3, %v1321_v3, 0.0  ;;  %936 = vst.msk [vmem:[%s2669_s15 + $0xa0] sm:$0xff] %vm915_vm3, %v741_v1  ;;  %v1323_v30 = vsel %vm1131_vm9, %v741_v1, 0.0  ;;  %v744_v19 = vadd.f32 %v2650_v23, %v743_v13  ;;  %vm1137_vm15 = vcmp.lt.s32.totalorder %v2675_v34, 2738 }
 0x15a   : > { %v2983_v58 = vadd.s32 %v2557_v41, %v1027_v54  ;;  %v1403_v7 = vadd.f32 %v1402_v63, %v1401_v11  ;;  %v1600_v32 = vadd.f32 %v1599_v20, %v1598_v60  ;;  %v1522_v38 = vmul.f32 %v1323_v30, %v1323_v30  ;;  %939 = vst.msk [vmem:[%s2669_s15 + $0xb8] sm:$0xff] %vm915_vm3, %v752_v0  ;;  %v3002_v20 = vpop.f32.mrb[19].mxu1 }
 0x15b   : > { %v2990_v3 = vadd.s32 400, %v2553_v39  ;;  %v1601_v28 = vsel %vm915_vm3, %v1520_v26, 0.0  ;;  %v1404_v17 = vsel %vm915_vm3, %v1322_v14, 0.0  ;;  %v1406_v52 = vsel %vm915_vm3, %v1323_v30, 0.0  ;;  %937 = vst.msk [vmem:[%s2669_s15 + $0xa8] sm:$0xff] %vm915_vm3, %v744_v19 }
 0x15c   : > { %v1324_v54 = vsel %vm1132_vm10, %v744_v19, 0.0  ;;  %vm1138_vm0 = vcmp.lt.s32.totalorder %v2684_v40, 2738  ;;  %v1603_v1 = vsel %vm915_vm3, %v1521_v31, 0.0  ;;  %v1602_v45 = vadd.f32 %v1601_v28, %v1600_v32 }
 0x15d   : > { %v1325_v60 = vsel %vm1133_vm11, %v749_v61, 0.0  ;;  %v1405_v26 = vadd.f32 %v1404_v17, %v1403_v7  ;;  %v1605_v14 = vsel %vm915_vm3, %v1522_v38, 0.0  ;;  %v1326_v11 = vsel %vm1134_vm12, %v752_v0, 0.0  ;;  %v2017_v63 = vpop.f32.mrb[24].mxu0 }
 0x15e   : > { %v1408_v13 = vsel %vm915_vm3, %v1324_v54, 0.0  ;;  %v1523_v33 = vmul.f32 %v1324_v54, %v1324_v54  ;;  %vm1143_vm1 = vcmp.lt.s32.totalorder %v2722_v6, 2738  ;;  %v1604_v19 = vadd.f32 %v1603_v1, %v1602_v45  ;;  %v756_v24 = vpop.f32.mrb[25].mxu0  ;;  %v3035_v1 = vpop.f32.mrb[20].mxu1 }
 0x15f   : > { %v1407_v30 = vadd.f32 %v1406_v52, %v1405_v26  ;;  %v765_v31 = vadd.f32 %v2017_v63, %v2650_v23  ;;  %vm1139_vm2 = vcmp.lt.s32.totalorder %v2696_v49, 2738  ;;  %v3016_v61 = vadd.f32 %v2825_v25, %v2650_v23  ;;  %v2018_v32 = vpop.f32.mrb[26].mxu0 }
 0x160   : > { %v1524_v29 = vmul.f32 %v1325_v60, %v1325_v60  ;;  %v1607_v0 = vsel %vm915_vm3, %v1523_v33, 0.0  ;;  %v757_v7 = vadd.f32 %v2650_v23, %v756_v24  ;;  %vm1145_vm4 = vcmp.lt.s32.totalorder %v2717_v4, 2738  ;;  %v759_v52 = vpop.f32.mrb[27].mxu0 }
 0x161   : > { %v3023_v38 = vadd.f32 %v2650_v23, %v2838_v44  ;;  %v1606_v28 = vadd.f32 %v1605_v14, %v1604_v19  ;;  %v1409_v17 = vadd.f32 %v1408_v13, %v1407_v30  ;;  %942 = vst.msk [vmem:[%s2669_s15 + $0xd0] sm:$0xff] %vm915_vm3, %v765_v31  ;;  %v768_v25 = vadd.f32 %v2018_v32, %v2650_v23  ;;  %v3047_v13 = vpop.f32.mrb[21].mxu1 }
 0x162   : > { %vm1140_vm5 = vcmp.lt.s32.totalorder %v2706_v57, 2738  ;;  %954 = vst.msk [vmem:[%s2669_s15 + $0x130] sm:$0xff] %vm915_vm3, %v3016_v61  ;;  %v3033_v54 = vadd.s32 384, %v2553_v39  ;;  %v1410_v44 = vsel %vm915_vm3, %v1325_v60, 0.0  ;;  %v1525_v45 = vmul.f32 %v1326_v11, %v1326_v11  ;;  %940 = vst.msk [vmem:[%s2669_s15 + $0xc0] sm:$0xff] %vm915_vm3, %v757_v7  ;;  %v3054_v19 = vpop.f32.mrb[22].mxu1 }
 0x163   : > { %v1327_v26 = vsel %vm1135_vm13, %v757_v7, 0.0  ;;  %v760_v14 = vadd.f32 %v2650_v23, %v759_v52  ;;  %vm1141_vm6 = vcmp.lt.s32.totalorder %v2693_v48, 2738  ;;  %952 = vst.msk [vmem:[%s2669_s15 + $0x120] sm:$0xff] %vm915_vm3, %v3023_v38  ;;  %3645 = vst [vmem:[#allocation21_spill] sm:$0xff] %v3047_v13  ;;  %v1411_v33 = vadd.f32 %v1410_v44, %v1409_v17 }
 0x164   : > { %v1608_v63 = vadd.f32 %v1607_v0, %v1606_v28  ;;  %v1526_v30 = vmul.f32 %v1327_v26, %v1327_v26  ;;  %943 = vst.msk [vmem:[%s2669_s15 + $0xd8] sm:$0xff] %vm915_vm3, %v768_v25  ;;  %v3052_v60 = vadd.s32 408, %v2553_v39  ;;  %3646 = vst [vmem:[#allocation22_spill] sm:$0xff] %v3054_v19  ;;  %v1609_v35 = vsel %vm915_vm3, %v1524_v29, 0.0  ;;  %v3064_v0 = vpop.f32.mrb[23].mxu1 }
 0x165   : > { %v1412_v24 = vsel %vm915_vm3, %v1326_v11, 0.0  ;;  %v1414_v7 = vsel %vm915_vm3, %v1327_v26, 0.0  ;;  %941 = vst.msk [vmem:[%s2669_s15 + $0xc8] sm:$0xff] %vm915_vm3, %v760_v14  ;;  %v1328_v32 = vsel %vm1136_vm14, %v760_v14, 0.0  ;;  %vm1142_vm7 = vcmp.lt.s32.totalorder %v2703_v56, 2738  ;;  %v2021_v14 = vpop.f32.mrb[28].mxu0 }
 0x166   : > { %v1610_v28 = vadd.f32 %v1609_v35, %v1608_v63  ;;  %v1329_v17 = vsel %vm1137_vm15, %v765_v31, 0.0  ;;  %v1413_v52 = vadd.f32 %v1412_v24, %v1411_v33  ;;  %v3069_v29 = vadd.s32 392, %v2553_v39  ;;  %v772_v31 = vpop.f32.mrb[29].mxu0 }
 0x167   : > { %v1611_v11 = vsel %vm915_vm3, %v1525_v45, 0.0  ;;  %v1613_v44 = vsel %vm915_vm3, %v1526_v30, 0.0  ;;  %v1416_v26 = vsel %vm915_vm3, %v1328_v32, 0.0  ;;  %v1527_v46 = vmul.f32 %v1328_v32, %v1328_v32  ;;  %v2022_v35 = vpop.f32.mrb[30].mxu0 }
 0x168   : > { %v1415_v19 = vadd.f32 %v1414_v7, %v1413_v52  ;;  %v1612_v13 = vadd.f32 %v1611_v11, %v1610_v28  ;;  %v1330_v63 = vsel %vm1138_vm0, %v768_v25, 0.0  ;;  %v781_v34 = vadd.f32 %v2021_v14, %v2650_v23  ;;  %v775_v32 = vpop.f32.mrb[31].mxu0  ;;  %v3091_v52 = vpop.f32.mrb[24].mxu1 }
 0x169   : > { %vm1146_vm8 = vcmp.lt.s32.totalorder %v2725_v10, 2738  ;;  %v1528_v33 = vmul.f32 %v1329_v17, %v1329_v17  ;;  %v1615_v45 = vsel %vm915_vm3, %v1527_v46, 0.0  ;;  %v773_v30 = vadd.f32 %v2650_v23, %v772_v31 }
 0x16a   : > { %vm1144_vm9 = vcmp.lt.s32.totalorder %v2742_v53, 2738  ;;  %v3083_v24 = vadd.s32 %v2557_v41, %v2990_v3  ;;  %v1614_v40 = vadd.f32 %v1613_v44, %v1612_v13  ;;  %v1417_v25 = vadd.f32 %v1416_v26, %v1415_v19  ;;  %946 = vst.msk [vmem:[%s2669_s15 + $0xf0] sm:$0xff] %vm915_vm3, %v781_v34  ;;  %v3100_v19 = vpop.f32.mrb[25].mxu1 }
 0x16b   : > { %v784_v7 = vadd.f32 %v2022_v35, %v2650_v23  ;;  %v1335_v28 = vsel %vm1143_vm1, %v2788_v55, 0.0  ;;  %v1418_v11 = vsel %vm915_vm3, %v1329_v17, 0.0  ;;  %v1529_v46 = vmul.f32 %v1330_v63, %v1330_v63  ;;  %944 = vst.msk [vmem:[%s2669_s15 + $0xe0] sm:$0xff] %vm915_vm3, %v773_v30  ;;  %v3109_v26 = vpop.f32.mrb[26].mxu1 }
 0x16c   : > { %v1331_v3 = vsel %vm1139_vm2, %v773_v30, 0.0  ;;  %v776_v13 = vadd.f32 %v2650_v23, %v775_v32  ;;  %vm1147_vm10 = vcmp.lt.s32.totalorder %v2759_v2, 2738  ;;  %v1419_v44 = vadd.f32 %v1418_v11, %v1417_v25  ;;  %v3118_v30 = vpop.f32.mrb[27].mxu1 }
 0x16d   : > { %v1616_v6 = vadd.f32 %v1615_v45, %v1614_v40  ;;  %v1530_v55 = vmul.f32 %v1331_v3, %v1331_v3  ;;  %947 = vst.msk [vmem:[%s2669_s15 + $0xf8] sm:$0xff] %vm915_vm3, %v784_v7  ;;  %v3107_v17 = vsel %vm1145_vm4, %v2785_v42, 0.0  ;;  %v1617_v49 = vsel %vm915_vm3, %v1528_v33, 0.0 }
 0x16e   : > { %v1420_v14 = vsel %vm915_vm3, %v1330_v63, 0.0  ;;  %v1422_v31 = vsel %vm915_vm3, %v1331_v3, 0.0  ;;  %945 = vst.msk [vmem:[%s2669_s15 + $0xe8] sm:$0xff] %vm915_vm3, %v776_v13  ;;  %v1332_v45 = vsel %vm1140_vm5, %v776_v13, 0.0  ;;  %v1333_v4 = vsel %vm1141_vm6, %v781_v34, 0.0 }
 0x16f   : > { %v1618_v35 = vadd.f32 %v1617_v49, %v1616_v6  ;;  %v1421_v42 = vadd.f32 %v1420_v14, %v1419_v44  ;;  %v1534_v40 = vmul.f32 %v1335_v28, %v1335_v28  ;;  %v1619_v25 = vsel %vm915_vm3, %v1529_v46, 0.0 }
 0x170   : > { %v1621_v63 = vsel %vm915_vm3, %v1530_v55, 0.0  ;;  %v1424_v33 = vsel %vm915_vm3, %v1332_v45, 0.0  ;;  %v1531_v32 = vmul.f32 %v1332_v45, %v1332_v45  ;;  %vm1149_vm11 = vcmp.lt.s32.totalorder %v2752_v50, 2738 }
 0x171   : > { %v1423_v57 = vadd.f32 %v1422_v31, %v1421_v42  ;;  %v1620_v11 = vadd.f32 %v1619_v25, %v1618_v35  ;;  %v1334_v3 = vsel %vm1142_vm7, %v784_v7, 0.0  ;;  %v3130_v48 = vadd.f32 %v2845_v59, %v2650_v23 }
 0x172   : > { %v1532_v34 = vmul.f32 %v1333_v4, %v1333_v4  ;;  %v1623_v46 = vsel %vm915_vm3, %v1531_v32, 0.0  ;;  %v3135_v13 = vadd.f32 %v2650_v23, %v2851_v43  ;;  %vm1148_vm12 = vcmp.lt.s32.totalorder %v2771_v22, 2738  ;;  %v3153_v43 = vpop.f32.mrb[28].mxu1  ;;  %v3651_v22 = vld [vmem:[#allocation19_spill] sm:$0xff] }
 0x173   : > { %v3140_v44 = vadd.f32 %v2875_v36, %v2650_v23  ;;  %v1622_v56 = vadd.f32 %v1621_v63, %v1620_v11  ;;  %v1425_v7 = vadd.f32 %v1424_v33, %v1423_v57  ;;  %955 = vst.msk [vmem:[%s2669_s15 + $0x138] sm:$0xff] %vm915_vm3, %v3130_v48  ;;  %v3147_v59 = vadd.s32 %v2557_v41, %v3033_v54  ;;  %v3168_v54 = vpop.f32.mrb[29].mxu1 }
 0x174   : > { %v3151_v6 = vadd.s32 %v2557_v41, %v3052_v60  ;;  %v1426_v55 = vsel %vm915_vm3, %v1333_v4, 0.0  ;;  %v1533_v49 = vmul.f32 %v1334_v3, %v1334_v3  ;;  %v1536_v36 = vmul.f32 %v3107_v17, %v3107_v17  ;;  %953 = vst.msk [vmem:[%s2669_s15 + $0x128] sm:$0xff] %vm915_vm3, %v3135_v13 }
 0x175   : > { %v1338_v14 = vsel %vm1146_vm8, %v2791_v37, 0.0  ;;  %vm1150_vm13 = vcmp.lt.s32.totalorder %v2762_v5, 2738  ;;  %958 = vst.msk [vmem:[%s2669_s15 + $0x150] sm:$0xff] %vm915_vm3, %v3140_v44  ;;  %v1427_v60 = vadd.f32 %v1426_v55, %v1425_v7  ;;  %v1624_v31 = vadd.f32 %v1623_v46, %v1622_v56  ;;  %v3174_v37 = vpop.f32.mrb[30].mxu1 }
 0x176   : > { %v1430_v45 = vsel %vm915_vm3, %v1335_v28, 0.0  ;;  %v1336_v10 = vsel %vm1144_vm9, %v2808_v18, 0.0  ;;  %v1625_v35 = vsel %vm915_vm3, %v1532_v34, 0.0  ;;  %v1428_v4 = vsel %vm915_vm3, %v1334_v3, 0.0  ;;  %v3182_v63 = vpop.f32.mrb[31].mxu1  ;;  %v3648_v3 = vld [vmem:[#allocation14_spill] sm:$0xff] }
 0x177   : > { %v1629_v42 = vsel %vm915_vm3, %v1534_v40, 0.0  ;;  %v821_v25 = vadd.f32 %v2650_v23, %v2886_v16  ;;  %vm1151_vm14 = vcmp.lt.s32.totalorder %v2856_v27, 2738  ;;  %v1626_v28 = vadd.f32 %v1625_v35, %v1624_v31  ;;  %v3647_v16 = vld [vmem:[#allocation17_spill] sm:$0xff] }
 0x178   : > { %v1429_v33 = vadd.f32 %v1428_v4, %v1427_v60  ;;  %v1339_v53 = vsel %vm1147_vm10, %v3023_v38, 0.0  ;;  %v3189_v18 = vadd.f32 %v2895_v9, %v2650_v23  ;;  %v1627_v40 = vsel %vm915_vm3, %v1533_v49, 0.0  ;;  %v3650_v4 = vld [vmem:[#allocation15_spill] sm:$0xff] }
 0x179   : > { %v1535_v32 = vmul.f32 %v1336_v10, %v1336_v10  ;;  %956 = vst.msk [vmem:[%s2669_s15 + $0x140] sm:$0xff] %vm915_vm3, %v821_v25  ;;  %v3196_v57 = vadd.f32 %v2650_v23, %v3647_v16  ;;  %v3200_v11 = vadd.f32 %v2923_v47, %v2650_v23  ;;  %v1628_v38 = vadd.f32 %v1627_v40, %v1626_v28  ;;  %v3649_v47 = vld [vmem:[#allocation16_spill] sm:$0xff] }
 0x17a   : > { %v1431_v2 = vadd.f32 %v1430_v45, %v1429_v33  ;;  %vm1153_vm15 = vcmp.lt.s32.totalorder %v3648_v3, 2738  ;;  %959 = vst.msk [vmem:[%s2669_s15 + $0x158] sm:$0xff] %vm915_vm3, %v3189_v18  ;;  %v3208_v9 = vadd.s32 %v2557_v41, %v3069_v29  ;;  %v1036_v34 = vadd.s32 432, %v2553_v39 }
 0x17b   : > { %v1537_v46 = vmul.f32 %v1338_v14, %v1338_v14  ;;  %v1432_v56 = vsel %vm915_vm3, %v1336_v10, 0.0  ;;  %v1538_v7 = vmul.f32 %v1339_v53, %v1339_v53  ;;  %957 = vst.msk [vmem:[%s2669_s15 + $0x148] sm:$0xff] %vm915_vm3, %v3196_v57  ;;  %vm1152_vm0 = vcmp.lt.s32.totalorder %v3649_v47, 2738  ;;  %962 = vst.msk [vmem:[%s2669_s15 + $0x170] sm:$0xff] %vm915_vm3, %v3200_v11 }
 0x17c   : > { %v3221_v55 = vadd.f32 %v2650_v23, %v2932_v62  ;;  %v1630_v29 = vadd.f32 %v1629_v42, %v1628_v38  ;;  %v1433_v49 = vadd.f32 %v1432_v56, %v1431_v2  ;;  %v1341_v60 = vsel %vm1149_vm11, %v3016_v61, 0.0  ;;  %v3652_v38 = vld [vmem:[#allocation20_spill] sm:$0xff] }
 0x17d   : > { %v1034_v31 = vadd.s32 416, %v2553_v39  ;;  %v1434_v45 = vsel %vm915_vm3, %v3107_v17, 0.0  ;;  %v1633_v10 = vsel %vm915_vm3, %v1536_v36, 0.0  ;;  %v1631_v35 = vsel %vm915_vm3, %v1535_v32, 0.0 }
 0x17e   : > { %vm1154_vm1 = vcmp.lt.s32.totalorder %v3650_v4, 2738  ;;  %960 = vst.msk [vmem:[%s2669_s15 + $0x160] sm:$0xff] %vm915_vm3, %v3221_v55  ;;  %v1037_v62 = vadd.s32 440, %v2553_v39  ;;  %v1436_v42 = vsel %vm915_vm3, %v1338_v14, 0.0  ;;  %v1435_v50 = vadd.f32 %v1434_v45, %v1433_v49 }
 0x17f   : > { %v1632_v61 = vadd.f32 %v1631_v35, %v1630_v29  ;;  %v1340_v28 = vsel %vm1148_vm12, %v3135_v13, 0.0  ;;  %v1635_v17 = vsel %vm915_vm3, %v1537_v46, 0.0  ;;  %v1540_v36 = vmul.f32 %v1341_v60, %v1341_v60  ;;  %v3653_v29 = vld [vmem:[#allocation18_spill] sm:$0xff] }
 0x180   : > { %v1438_v33 = vsel %vm915_vm3, %v1339_v53, 0.0  ;;  %v1637_v40 = vsel %vm915_vm3, %v1538_v7, 0.0  ;;  %vm1155_vm2 = vcmp.lt.s32.totalorder %v2962_v15, 2738  ;;  %v1437_v16 = vadd.f32 %v1436_v42, %v1435_v50 }
 0x181   : > { %v1634_v32 = vadd.f32 %v1633_v10, %v1632_v61  ;;  %v1342_v14 = vsel %vm1150_vm13, %v3130_v48, 0.0  ;;  %v3249_v13 = vadd.f32 %v3651_v22, %v2650_v23  ;;  %v1539_v2 = vmul.f32 %v1340_v28, %v1340_v28 }
 0x182   : > { %v3253_v53 = vadd.f32 %v2650_v23, %v3652_v38  ;;  %v3257_v46 = vadd.f32 %v2973_v8, %v2650_v23  ;;  %v3261_v56 = vadd.f32 %v2650_v23, %v2985_v51  ;;  %v1439_v5 = vadd.f32 %v1438_v33, %v1437_v16 }
 0x183   : > { %v1636_v48 = vadd.f32 %v1635_v17, %v1634_v32  ;;  %v1343_v7 = vsel %vm1151_vm14, %v821_v25, 0.0  ;;  %vm1157_vm4 = vcmp.lt.s32.totalorder %v3653_v29, 2738  ;;  %963 = vst.msk [vmem:[%s2669_s15 + $0x178] sm:$0xff] %vm915_vm3, %v3249_v13  ;;  %v3271_v49 = vadd.f32 %v2992_v21, %v2650_v23 }
 0x184   : > { %v1541_v8 = vmul.f32 %v1342_v14, %v1342_v14  ;;  %v1440_v45 = vsel %vm915_vm3, %v1340_v28, 0.0  ;;  %961 = vst.msk [vmem:[%s2669_s15 + $0x168] sm:$0xff] %vm915_vm3, %v3253_v53  ;;  %vm1156_vm5 = vcmp.lt.s32.totalorder %v2983_v58, 2738  ;;  %966 = vst.msk [vmem:[%s2669_s15 + $0x190] sm:$0xff] %vm915_vm3, %v3257_v46  ;;  %v3285_v27 = vadd.s32 %v2557_v41, %v1036_v34 }
 0x185   : > { %964 = vst.msk [vmem:[%s2669_s15 + $0x180] sm:$0xff] %vm915_vm3, %v3261_v56  ;;  %v1035_v23 = vadd.s32 424, %v2553_v39  ;;  %v1638_v51 = vadd.f32 %v1637_v40, %v1636_v48  ;;  %v1441_v21 = vadd.f32 %v1440_v45, %v1439_v5  ;;  %967 = vst.msk [vmem:[%s2669_s15 + $0x198] sm:$0xff] %vm915_vm3, %v3271_v49  ;;  %v3292_v25 = vadd.s32 %v2557_v41, %v1034_v31 }
 0x186   : > { %v3295_v10 = vadd.s32 %v2557_v41, %v1037_v62  ;;  %v1442_v35 = vsel %vm915_vm3, %v1341_v60, 0.0  ;;  %v1639_v42 = vsel %vm915_vm3, %v1539_v2, 0.0  ;;  %v1345_v34 = vsel %vm1153_vm15, %v3140_v44, 0.0  ;;  %v3311_v44 = vld [vmem:[#allocation5] ss:$0 sm:$0xff] }
 0x187   : > { %v1542_v50 = vmul.f32 %v1343_v7, %v1343_v7  ;;  %v1641_v61 = vsel %vm915_vm3, %v1540_v36, 0.0  ;;  %v1443_v28 = vadd.f32 %v1442_v35, %v1441_v21  ;;  %v1640_v17 = vadd.f32 %v1639_v42, %v1638_v51 }
 0x188   : > { %v1344_v31 = vsel %vm1152_vm0, %v3196_v57, 0.0  ;;  %vm1158_vm6 = vcmp.lt.s32.totalorder %v2967_v12, 2738  ;;  %v1444_v60 = vsel %vm915_vm3, %v1342_v14, 0.0  ;;  %v1643_v62 = vsel %vm915_vm3, %v1541_v8, 0.0 }
 0x189   : > { %v1446_v33 = vsel %vm915_vm3, %v1343_v7, 0.0  ;;  %vm1159_vm7 = vcmp.lt.s32.totalorder %v3147_v59, 2738  ;;  %v3315_v3 = vadd.f32 %v3311_v44, %v3002_v20  ;;  %v1642_v36 = vadd.f32 %v1641_v61, %v1640_v17  ;;  %v3654_v20 = vld [vmem:[#allocation21_spill] sm:$0xff] }
 0x18a   : > { %v1544_v47 = vmul.f32 %v1345_v34, %v1345_v34  ;;  %v1445_v57 = vadd.f32 %v1444_v60, %v1443_v28  ;;  %v1346_v40 = vsel %vm1154_vm1, %v3189_v18, 0.0  ;;  %v1645_v32 = vsel %vm915_vm3, %v1542_v50, 0.0 }
 0x18b   : > { %v1543_v16 = vmul.f32 %v1344_v31, %v1344_v31  ;;  %965 = vst.msk [vmem:[%s2669_s15 + $0x188] sm:$0xff] %vm915_vm3, %v3315_v3  ;;  %v3326_v14 = vadd.f32 %v3311_v44, %v3035_v1  ;;  %v3330_v22 = vadd.f32 %v3311_v44, %v3654_v20  ;;  %v1644_v38 = vadd.f32 %v1643_v62, %v1642_v36  ;;  %v3655_v1 = vld [vmem:[#allocation22_spill] sm:$0xff] }
 0x18c   : > { %v1447_v2 = vadd.f32 %v1446_v33, %v1445_v57  ;;  %v1347_v18 = vsel %vm1155_vm2, %v3221_v55, 0.0  ;;  %v3336_v4 = vadd.s32 %v2557_v41, %v1035_v23  ;;  %v1545_v5 = vmul.f32 %v1346_v40, %v1346_v40 }
 0x18d   : > { %v1448_v48 = vsel %vm915_vm3, %v1344_v31, 0.0  ;;  %vm1160_vm8 = vcmp.lt.s32.totalorder %v3208_v9, 2738  ;;  %970 = vst.msk [vmem:[%s2669_s15 + $0x1b0] sm:$0xff] %vm915_vm3, %v3326_v14  ;;  %968 = vst.msk [vmem:[%s2669_s15 + $0x1a0] sm:$0xff] %vm915_vm3, %v3330_v22  ;;  %v3348_v7 = vadd.f32 %v3311_v44, %v3655_v1  ;;  %v1040_v15 = vadd.s32 464, %v2553_v39 }
 0x18e   : > { %v1450_v55 = vsel %vm915_vm3, %v1345_v34, 0.0  ;;  %v1646_v8 = vadd.f32 %v1645_v32, %v1644_v38  ;;  %v1449_v45 = vadd.f32 %v1448_v48, %v1447_v2  ;;  %vm1161_vm9 = vcmp.lt.s32.totalorder %v3083_v24, 2738 }
 0x18f   : > { %v1038_v23 = vadd.s32 448, %v2553_v39  ;;  %v1649_v51 = vsel %vm915_vm3, %v1544_v47, 0.0  ;;  %v1647_v21 = vsel %vm915_vm3, %v1543_v16, 0.0  ;;  %v1349_v35 = vsel %vm1157_vm4, %v3200_v11, 0.0  ;;  %971 = vst.msk [vmem:[%s2669_s15 + $0x1b8] sm:$0xff] %vm915_vm3, %v3348_v7 }
 0x190   : > { %v1546_v42 = vmul.f32 %v1347_v18, %v1347_v18  ;;  %v1452_v34 = vsel %vm915_vm3, %v1346_v40, 0.0  ;;  %v1451_v50 = vadd.f32 %v1450_v55, %v1449_v45  ;;  %v1648_v61 = vadd.f32 %v1647_v21, %v1646_v8 }
 0x191   : > { %v1348_v28 = vsel %vm1156_vm5, %v3253_v53, 0.0  ;;  %vm1162_vm10 = vcmp.lt.s32.totalorder %v3151_v6, 2738  ;;  %v1651_v17 = vsel %vm915_vm3, %v1545_v5, 0.0  ;;  %v1454_v11 = vsel %vm915_vm3, %v1347_v18, 0.0 }
 0x192   : > { %v3371_v29 = vadd.f32 %v3311_v44, %v3064_v0  ;;  %v3375_v31 = vadd.f32 %v3311_v44, %v3091_v52  ;;  %v1650_v60 = vadd.f32 %v1649_v51, %v1648_v61  ;;  %v1453_v62 = vadd.f32 %v1452_v34, %v1451_v50 }
 0x193   : > { %v3379_v58 = vadd.f32 %v3311_v44, %v3100_v19  ;;  %v3383_v53 = vadd.f32 %v3311_v44, %v3109_v26  ;;  %v1653_v0 = vsel %vm915_vm3, %v1546_v42, 0.0  ;;  %v1350_v33 = vsel %vm1158_vm6, %v3249_v13, 0.0 }
 0x194   : > { %v1547_v52 = vmul.f32 %v1348_v28, %v1348_v28  ;;  %969 = vst.msk [vmem:[%s2669_s15 + $0x1a8] sm:$0xff] %vm915_vm3, %v3371_v29  ;;  %974 = vst.msk [vmem:[%s2669_s15 + $0x1d0] sm:$0xff] %vm915_vm3, %v3375_v31  ;;  %v3397_v19 = vadd.f32 %v3311_v44, %v3118_v30  ;;  %v1455_v26 = vadd.f32 %v1454_v11, %v1453_v62  ;;  %v1351_v47 = vsel %vm1159_vm7, %v3261_v56, 0.0 }
 0x195   : > { %v1652_v36 = vadd.f32 %v1651_v17, %v1650_v60  ;;  %vm1163_vm11 = vcmp.lt.s32.totalorder %v3292_v25, 2738  ;;  %972 = vst.msk [vmem:[%s2669_s15 + $0x1c0] sm:$0xff] %vm915_vm3, %v3379_v58  ;;  %975 = vst.msk [vmem:[%s2669_s15 + $0x1d8] sm:$0xff] %vm915_vm3, %v3383_v53  ;;  %v1548_v12 = vmul.f32 %v1349_v35, %v1349_v35  ;;  %v1456_v13 = vsel %vm915_vm3, %v1348_v28, 0.0 }
 0x196   : > { %v1041_v30 = vadd.s32 472, %v2553_v39  ;;  %973 = vst.msk [vmem:[%s2669_s15 + $0x1c8] sm:$0xff] %vm915_vm3, %v3397_v19  ;;  %v1039_v57 = vadd.s32 456, %v2553_v39  ;;  %v1549_v56 = vmul.f32 %v1350_v33, %v1350_v33  ;;  %v1457_v40 = vadd.f32 %v1456_v13, %v1455_v26 }
 0x197   : > { %v1654_v59 = vadd.f32 %v1653_v0, %v1652_v36  ;;  %v3416_v32 = vadd.s32 %v2557_v41, %v1040_v15  ;;  %v1458_v16 = vsel %vm915_vm3, %v1349_v35, 0.0  ;;  %v1655_v20 = vsel %vm915_vm3, %v1547_v52, 0.0 }
 0x198   : > { %v1550_v2 = vmul.f32 %v1351_v47, %v1351_v47  ;;  %vm1165_vm12 = vcmp.lt.s32.totalorder %v3285_v27, 2738  ;;  %v1103_v38 = vadd.s32 %v2557_v41, %v1038_v23  ;;  %v1459_v18 = vadd.f32 %v1458_v16, %v1457_v40 }
 0x199   : > { %v1656_v5 = vadd.f32 %v1655_v20, %v1654_v59  ;;  %v1352_v48 = vsel %vm1160_vm8, %v3315_v3, 0.0  ;;  %v3427_v1 = vadd.f32 %v3311_v44, %v3153_v43  ;;  %v1657_v15 = vsel %vm915_vm3, %v1548_v12, 0.0 }
 0x19a   : > { %v1460_v55 = vsel %vm915_vm3, %v1350_v33, 0.0  ;;  %v1353_v8 = vsel %vm1161_vm9, %v3257_v46, 0.0  ;;  %v1462_v45 = vsel %vm915_vm3, %v1351_v47, 0.0  ;;  %v1659_v23 = vsel %vm915_vm3, %v1549_v56, 0.0 }
 0x19b   : > { %v1658_v51 = vadd.f32 %v1657_v15, %v1656_v5  ;;  %v1461_v9 = vadd.f32 %v1460_v55, %v1459_v18  ;;  %978 = vst.msk [vmem:[%s2669_s15 + $0x1f0] sm:$0xff] %vm915_vm3, %v3427_v1  ;;  %v3441_v43 = vadd.f32 %v3311_v44, %v3168_v54  ;;  %v1661_v3 = vsel %vm915_vm3, %v1550_v2, 0.0 }
 0x19c   : > { %v1354_v24 = vsel %vm1162_vm10, %v3271_v49, 0.0  ;;  %v1551_v46 = vmul.f32 %v1352_v48, %v1352_v48  ;;  %v3449_v21 = vadd.f32 %v3311_v44, %v3174_v37  ;;  %v1355_v34 = vsel %vm1163_vm11, %v3330_v22, 0.0 }
 0x19d   : > { %v1463_v35 = vadd.f32 %v1462_v45, %v1461_v9  ;;  %v1660_v42 = vadd.f32 %v1659_v23, %v1658_v51  ;;  %976 = vst.msk [vmem:[%s2669_s15 + $0x1e0] sm:$0xff] %vm915_vm3, %v3441_v43  ;;  %v3459_v54 = vadd.f32 %v3311_v44, %v3182_v63  ;;  %v1552_v6 = vmul.f32 %v1353_v8, %v1353_v8 }
 0x19e   : > { %v1464_v49 = vsel %vm915_vm3, %v1352_v48, 0.0  ;;  %vm1166_vm13 = vcmp.lt.s32.totalorder %v3295_v10, 2738  ;;  %vm1164_vm14 = vcmp.lt.s32.totalorder %v3336_v4, 2738  ;;  %979 = vst.msk [vmem:[%s2669_s15 + $0x1f8] sm:$0xff] %vm915_vm3, %v3449_v21  ;;  %v1106_v22 = vadd.s32 %v2557_v41, %v1041_v30 }
 0x19f   : > { %v1662_v37 = vadd.f32 %v1661_v3, %v1660_v42  ;;  %v1465_v25 = vadd.f32 %v1464_v49, %v1463_v35  ;;  %v1104_v50 = vadd.s32 %v2557_v41, %v1039_v57  ;;  %977 = vst.msk [vmem:[%s2669_s15 + $0x1e8] sm:$0xff] %vm915_vm3, %v3459_v54  ;;  %v1466_v63 = vsel %vm915_vm3, %v1353_v8, 0.0  ;;  %s2224_s15 = scalar_lea.vmem %s2223_s14, 32 }
 0x1a0   : > { %v1553_v44 = vmul.f32 %v1354_v24, %v1354_v24  ;;  %v1663_v61 = vsel %vm915_vm3, %v1551_v46, 0.0  ;;  %v1554_v28 = vmul.f32 %v1355_v34, %v1355_v34  ;;  %vm1169_vm15 = vcmp.lt.s32.totalorder %v3416_v32, 2738  ;;  %p2226_p7 = scmp.lt.s32.totalorder %s2224_s15, %s2218_s12 }
 0x1a1   : > { %v1467_v4 = vadd.f32 %v1466_v63, %v1465_v25  ;;  %v1664_v17 = vadd.f32 %v1663_v61, %v1662_v37  ;;  %v1356_v11 = vsel %vm1164_vm14, %v3371_v29, 0.0  ;;  %vm1167_vm0 = vcmp.lt.s32.totalorder %v1103_v38, 2738 }
 0x1a2   : > { %v1665_v60 = vsel %vm915_vm3, %v1552_v6, 0.0  ;;  %v1468_v62 = vsel %vm915_vm3, %v1354_v24, 0.0  ;;  %v1470_v0 = vsel %vm915_vm3, %v1355_v34, 0.0  ;;  %v1042_v33 = vadd.s32 480, %v2553_v39  ;;  %p2227_p8 = por %p2226_p7, %p2225_p4 }
 0x1a3   : > { %v1666_v52 = vadd.f32 %v1665_v60, %v1664_v17  ;;  %v1357_v26 = vsel %vm1165_vm12, %v3326_v14, 0.0  ;;  %v1469_v36 = vadd.f32 %v1468_v62, %v1467_v4  ;;  %vm1170_vm1 = vcmp.lt.s32.totalorder %v1106_v22, 2738 }
 0x1a4   : > { %v1667_v47 = vsel %vm915_vm3, %v1553_v44, 0.0  ;;  %v1669_v29 = vsel %vm915_vm3, %v1554_v28, 0.0  ;;  %v1555_v12 = vmul.f32 %v1356_v11, %v1356_v11  ;;  %v1043_v13 = vadd.s32 488, %v2553_v39  ;;  %p2228_p11 = pnand %p2227_p8, %p2221_p3 }
 0x1a5   : > { %v1471_v30 = vadd.f32 %v1470_v0, %v1469_v36  ;;  %v1668_v57 = vadd.f32 %v1667_v47, %v1666_v52  ;;  %v1358_v59 = vsel %vm1166_vm13, %v3348_v7, 0.0  ;;  %v1359_v56 = vsel %vm1167_vm0, %v3379_v58, 0.0 }
 0x1a6   : > { %v1556_v27 = vmul.f32 %v1357_v26, %v1357_v26  ;;  %v1472_v14 = vsel %vm915_vm3, %v1356_v11, 0.0  ;;  %vm1168_vm2 = vcmp.lt.s32.totalorder %v1104_v50, 2738  ;;  %v1107_v40 = vadd.s32 %v2557_v41, %v1042_v33 }
 0x1a7   : > { %v1670_v16 = vadd.f32 %v1669_v29, %v1668_v57  ;;  %v1473_v20 = vadd.f32 %v1472_v14, %v1471_v30  ;;  %v1044_v2 = vadd.s32 496, %v2553_v39  ;;  %v1045_v18 = vadd.s32 504, %v2553_v39 }
 0x1a8   : > { %v1474_v5 = vsel %vm915_vm3, %v1357_v26, 0.0  ;;  %v1557_v48 = vmul.f32 %v1358_v59, %v1358_v59  ;;  %v1671_v10 = vsel %vm915_vm3, %v1555_v12, 0.0  ;;  %v1558_v7 = vmul.f32 %v1359_v56, %v1359_v56 }
 0x1a9   : > { %v1475_v38 = vadd.f32 %v1474_v5, %v1473_v20  ;;  %v1672_v58 = vadd.f32 %v1671_v10, %v1670_v16  ;;  %v1360_v15 = vsel %vm1168_vm2, %v3397_v19, 0.0  ;;  %v1108_v55 = vadd.s32 %v2557_v41, %v1043_v13 }
 0x1aa   : > { %v1673_v8 = vsel %vm915_vm3, %v1556_v27, 0.0  ;;  %v1476_v45 = vsel %vm915_vm3, %v1358_v59, 0.0  ;;  %v1478_v23 = vsel %vm915_vm3, %v1359_v56, 0.0  ;;  %vm1171_vm4 = vcmp.lt.s32.totalorder %v1107_v40, 2738 }
 0x1ab   : > { %v1674_v39 = vadd.f32 %v1673_v8, %v1672_v58  ;;  %v1361_v51 = vsel %vm1169_vm15, %v3375_v31, 0.0  ;;  %v1477_v9 = vadd.f32 %v1476_v45, %v1475_v38  ;;  %v1109_v3 = vadd.s32 %v2557_v41, %v1044_v2 }
 0x1ac   : > { %v1675_v24 = vsel %vm915_vm3, %v1557_v48, 0.0  ;;  %v1677_v19 = vsel %vm915_vm3, %v1558_v7, 0.0  ;;  %v1559_v46 = vmul.f32 %v1360_v15, %v1360_v15  ;;  %v1362_v34 = vsel %vm1170_vm1, %v3383_v53, 0.0 }
 0x1ad   : > { %v1479_v35 = vadd.f32 %v1478_v23, %v1477_v9  ;;  %v1676_v42 = vadd.f32 %v1675_v24, %v1674_v39  ;;  %v1363_v6 = vsel %vm1171_vm4, %v3441_v43, 0.0  ;;  %v1560_v49 = vmul.f32 %v1361_v51, %v1361_v51 }
 0x1ae   : > { %v1480_v37 = vsel %vm915_vm3, %v1360_v15, 0.0  ;;  %v1110_v31 = vadd.s32 %v2557_v41, %v1045_v18  ;;  %vm1172_vm5 = vcmp.lt.s32.totalorder %v1108_v55, 2738  ;;  %vm1173_vm6 = vcmp.lt.s32.totalorder %v1109_v3, 2738 }
 0x1af   : > { %v1678_v32 = vadd.f32 %v1677_v19, %v1676_v42  ;;  %v1481_v25 = vadd.f32 %v1480_v37, %v1479_v35  ;;  %v1482_v50 = vsel %vm915_vm3, %v1361_v51, 0.0  ;;  %v1561_v63 = vmul.f32 %v1362_v34, %v1362_v34 }
 0x1b0   : > { %v1679_v44 = vsel %vm915_vm3, %v1559_v46, 0.0  ;;  %v1562_v61 = vmul.f32 %v1363_v6, %v1363_v6  ;;  %v1364_v53 = vsel %vm1172_vm5, %v3459_v54, 0.0  ;;  %v1681_v43 = vsel %vm915_vm3, %v1560_v49, 0.0 }
 0x1b1   : > { %v1483_v28 = vadd.f32 %v1482_v50, %v1481_v25  ;;  %v1680_v22 = vadd.f32 %v1679_v44, %v1678_v32  ;;  %v1484_v4 = vsel %vm915_vm3, %v1362_v34, 0.0  ;;  %v1486_v41 = vsel %vm915_vm3, %v1363_v6, 0.0 }
 0x1b2   : > { %vm1174_vm7 = vcmp.lt.s32.totalorder %v1110_v31, 2738  ;;  %v1365_v11 = vsel %vm1173_vm6, %v3427_v1, 0.0  ;;  %v1683_v62 = vsel %vm915_vm3, %v1561_v63, 0.0  ;;  %v1685_v0 = vsel %vm915_vm3, %v1562_v61, 0.0 }
 0x1b3   : > { %v1682_v17 = vadd.f32 %v1681_v43, %v1680_v22  ;;  %v1485_v60 = vadd.f32 %v1484_v4, %v1483_v28  ;;  %v1563_v33 = vmul.f32 %v1364_v53, %v1364_v53  ;;  %v1366_v54 = vsel %vm1174_vm7, %v3449_v21, 0.0 }
 0x1b4   : > { %v1564_v36 = vmul.f32 %v1365_v11, %v1365_v11  ;;  %v1488_v47 = vsel %vm915_vm3, %v1364_v53, 0.0  ;;  %v1490_v13 = vsel %vm915_vm3, %v1365_v11, 0.0  ;;  %v1565_v30 = vmul.f32 %v1366_v54, %v1366_v54 }
 0x1b5   : > { %v1487_v52 = vadd.f32 %v1486_v41, %v1485_v60  ;;  %v1684_v26 = vadd.f32 %v1683_v62, %v1682_v17  ;;  %v1687_v1 = vsel %vm915_vm3, %v1563_v33, 0.0  ;;  %v1492_v27 = vsel %vm915_vm3, %v1366_v54, 0.0 }
 0x1b6   : > { %v1689_v56 = vsel %vm915_vm3, %v1564_v36, 0.0  ;;  %v1691_v40 = vsel %vm915_vm3, %v1565_v30, 0.0  ;;  %vm1500_vm3 = vcmask 253952  }
 0x1b7   : > { %v1686_v29 = vadd.f32 %v1685_v0, %v1684_v26  ;;  %v1489_v12 = vadd.f32 %v1488_v47, %v1487_v52 }
 0x1b9   : > { %v1491_v57 = vadd.f32 %v1490_v13, %v1489_v12  ;;  %v1688_v59 = vadd.f32 %v1687_v1, %v1686_v29 }
 0x1bb   : > { %v1493_v14 = vadd.f32 %v1492_v27, %v1491_v57  ;;  %v1690_v21 = vadd.f32 %v1689_v56, %v1688_v59 }
 0x1bd   : > { %v1494_v16 = vrot.slane %v1493_v14, 4  ;;  %v1692_v20 = vadd.f32 %v1691_v40, %v1690_v21 }
 0x1bf   : > { %v1495_v2 = vadd.f32 %v1494_v16, %v1493_v14  ;;  %v1693_v18 = vrot.slane %v1692_v20, 4 }
 0x1c1   : > { %v1496_v5 = vrot.slane %v1495_v2, 2  ;;  %v1694_v48 = vadd.f32 %v1693_v18, %v1692_v20 }
 0x1c3   : > { %v1497_v10 = vadd.f32 %v1496_v5, %v1495_v2  ;;  %v1695_v7 = vrot.slane %v1694_v48, 2 }
 0x1c5   : > { %v1498_v38 = vrot.slane %v1497_v10, 1  ;;  %v1696_v58 = vadd.f32 %v1695_v7, %v1694_v48 }
 0x1c7   : > { %v1499_v15 = vadd.f32 %v1498_v38, %v1497_v10  ;;  %v1697_v55 = vrot.slane %v1696_v58, 1 }
 0x1c9   : > { %1501 = vst.msk [vmem:[%s256_s7] sm:$0x1] %vm1500_vm3, %v1499_v15  ;;  %v1698_v8 = vadd.f32 %v1697_v55, %v1696_v58 }
 0x1ca   : > { %2231 = shalt.err (!%p2228_p11)
}
 0x1cb   : > { %s2232_s17 = scalar_lea.hbm %s3540_s10, 16  ;;  %s2236_s30 = scalar_lea.hbm %s3620_s4, 96 }
 0x1cc   : > { %p2233_p13 = scmp.ne.s32.totalorder %s3540_s10, %s2232_s17  ;;  %p2237_p6 = scmp.lt.u32.totalorder %s3540_s10, %s3620_s4 }
 0x1cd   : > { %p2238_p9 = scmp.lt.u32.totalorder %s2236_s30, %s2232_s17  ;;  %p2240_p12 = scmp.lt.u32.totalorder %s2232_s17, %s3540_s10 }
 0x1ce   : > { %p2234_p0 = pnand %p2233_p13, %p3656_p1 }
 0x1cf   : > { %p2239_p10 = por %p2238_p9, %p2237_p6 }
 0x1d0   : > { %p2235_p5 = pneg %p2234_p0 }
 0x1d1   : > { %p2241_p2 = por %p2240_p12, %p2239_p10 }
 0x1d3   : > { %p2242_p3 = pnand %p2241_p2, %p2235_p5 }
 0x1d5   : > { %2245 = shalt.err (!%p2242_p3)
}
 0x1d6   : > { %2067 = dma.vmem_to_hbm [thread:$0]  (%p3656_p1), %s3542_s23, 16, %s3540_s10, %s1706_s11   ;;  %1699 = vst.msk [vmem:[%s262_s25] sm:$0x1] %vm1500_vm3, %v1698_v8 }
 0x1d7   : > { %s1710_s12 = scalar_lea.sflag [#allocation9], %s3530_s16  ;;  %s2246_s13 = scalar_lea.vmem %s3550_s26, 16 }
 0x1d8   : > { %p2247_p4 = scmp.ne.s32.totalorder %s3550_s26, %s2246_s13  ;;  %s2328_s14 = smov [#allocation8]  }
 0x1d9   : > { %s2250_s15 = sshll.u32 %s2328_s14, 4  ;;  %s2251_s15 = int_to_ptr.vmem [resolvable:$false] %s2250_s15 }
 0x1da   : > { %p2248_p7 = pnand %p2247_p4, %p3656_p1  ;;  %s2252_s17 = scalar_lea.vmem %s2251_s15, 32 }
 0x1db   : > { %p2253_p11 = scmp.lt.s32.totalorder %s3550_s26, %s2251_s15  ;;  %p2254_p13 = scmp.lt.s32.totalorder %s2252_s17, %s2246_s13 }
 0x1dc   : > { %p2249_p8 = pneg %p2248_p7 }
 0x1dd   : > { %p2255_p0 = por %p2254_p13, %p2253_p11 }
 0x1df   : > { %p2256_p5 = pnand %p2255_p0, %p2249_p8 }
 0x1e1   : > { %2259 = shalt.err (!%p2256_p5)
}
 0x1e2   : > { %s2260_s16 = scalar_lea.hbm %s3548_s9, 16  ;;  %s2264_s10 = scalar_lea.hbm %s3621_s5, 96 }
 0x1e3   : > { %p2261_p6 = scmp.ne.s32.totalorder %s3548_s9, %s2260_s16  ;;  %p2265_p12 = scmp.lt.u32.totalorder %s3548_s9, %s3621_s5 }
 0x1e4   : > { %p2266_p2 = scmp.lt.u32.totalorder %s2264_s10, %s2260_s16  ;;  %p2268_p4 = scmp.lt.u32.totalorder %s2260_s16, %s3548_s9 }
 0x1e5   : > { %p2262_p9 = pnand %p2261_p6, %p3656_p1 }
 0x1e6   : > { %p2267_p3 = por %p2266_p2, %p2265_p12 }
 0x1e7   : > { %p2263_p10 = pneg %p2262_p9 }
 0x1e8   : > { %p2269_p7 = por %p2268_p4, %p2267_p3 }
 0x1ea   : > { %p2270_p8 = pnand %p2269_p7, %p2263_p10 }
 0x1ec   : > { %2273 = shalt.err (!%p2270_p8)
}
 0x1ed   : > { %2068 = dma.vmem_to_hbm [thread:$0]  (%p3656_p1), %s3550_s26, 16, %s3548_s9, %s1710_s12  }
 0x1ee PF: > { %p2089_p11 = scmp.ge.s32.totalorder %s2320_s21, 2  ;;  %s1759_s8 = sand.u32 1, %s2308_s18  }
 0x1ef   : > { %p3657_p13 = scmp.ne.s32.totalorder %s3630_s29, 0  ;;  %s1760_s30 = scalar_lea.sflag [#allocation4], %s1759_s8 }
 0x1f1   : > { %p2079_p0 = pnand %p2089_p11, %p3657_p13 }
 0x1f3   : > { %2299 = dma.done.wait (!%p2079_p0), %s1760_s30, 16  }
 0x1f4   : > { %2301 = vsyncadd (!%p2079_p0), %s1760_s30, 4294967280  ;;  %s1768_s22 = scalar_lea.sflag [#allocation9], %s1759_s8 }
 0x1f5   : > { %2303 = dma.done.wait (!%p2079_p0), %s1768_s22, 16  }
 0x1f6   : > { %2305 = vsyncadd (!%p2079_p0), %s1768_s22, 4294967280  ;;  %p21_p1 = scmp.ge.s32.totalorder %s2384_s24, 8   ;;  %s3658_s18 = smov %s2312_s19 }
 0x1f7   : > { %s3659_s19 = smov %s2316_s20  ;;  %s3660_s20 = smov %s2395_s27 }
 0x1f8   : > { %s3661_s21 = smov %s2384_s24  ;;  %23 = sbr.rel (!%p21_p1) target bundleno = 7 (0x7), region = 105 }
 0x1ff   :  { %1772 = vsyncpa [#allocation3], 1 }
 0x200   :  { %1774 = vsyncpa [#allocation3 + $0x1], 1 }
 0x201   :  { %1775 = vsyncpa [#allocation6], 1 }
 0x202   :  { %1776 = vsyncpa [#allocation4], 1 }
 0x203   :  { %1778 = vsyncpa [#allocation4 + $0x1], 1 }
 0x204   :  { %1779 = vsyncpa [#allocation9], 1 }
 0x205   :  { %1781 = vsyncpa [#allocation9 + $0x1], 1 }

</bundles_post_ra>
